<compile_context>
chip_gen: v5e
topology: v5e:2x2
jax: 0.10.0
libtpu: 0.0.40
codegen_flags: <defaults>
</compile_context>

<pallas_src>
import jax
import jax.numpy as jnp
from jax import lax
from jax.experimental import pallas as pl
from jax.experimental.pallas import tpu as pltpu


def _round_up(a, m):
    return (a + m - 1) // m * m


def _vmem_limit_bytes():
    """Generation-gated scoped-VMEM budget (v7x has 64 MiB physical, v5e/v6e 128 MiB)."""
    try:
        phys = int(pltpu.get_tpu_info().vmem_capacity_bytes)
    except Exception:
        return 40 * 1024 * 1024  # conservative fallback, safe on every generation
    if phys <= 64 * 1024 * 1024:
        return 44 * 1024 * 1024
    return 80 * 1024 * 1024


def _choose_td(D, cap):
    """Depth planes per grid step: whole volume if it fits, else a large divisor of D."""
    if D <= cap:
        return D
    for td in range(cap, max(1, cap // 2), -1):   # avoid pathological padded tails
        if D % td == 0:
            return td
    return cap                                     # tail planes are zero-padded + gated


def _make_kernel(*, TD, KT, D, H, W, H_p, W_p, use_l2):
    """One grid step = TD depth planes of one (n, c) channel of the deformation field."""
    neg_h = H_p - 1
    neg_w = W_p - 1

    def fold(a):
        # (H_p, W_p) -> (8, 128): sum over aligned sublane/lane groups (VALU adds only,
        # stays in vregs; no cross-lane XLU reduce in the kernel).
        part = a[0:8]
        for r in range(1, H_p // 8):
            part = part + a[8 * r:8 * (r + 1)]
        out = part[:, 0:128]
        for c in range(1, W_p // 128):
            out = out + part[:, 128 * c:128 * (c + 1)]
        return out

    def plane_partials(pm, p, pp, mask_hw):
        # Central 2nd-derivative stencils on one plane.  H/W shifts are in-register
        # XLU rolls (boundary wrap is masked; squared stencils are sign/direction
        # invariant).  NOTE(v6e): if sublane rolls lower to shift+select chains,
        # source the H neighbors as sublane-offset VMEM reads instead (vld has slack).
        two_p = 2.0 * p
        p_ha = pltpu.roll(p, 1, 0)
        p_hb = pltpu.roll(p, neg_h, 0)
        p_wa = pltpu.roll(p, 1, 1)
        p_wb = pltpu.roll(p, neg_w, 1)
        dd = pp - pm                     # central 1st diff along D
        dh = p_ha - p_hb                 # central 1st diff along H
        ddx = (pp + pm) - two_p
        ddy = (p_ha + p_hb) - two_p
        ddz = (p_wa + p_wb) - two_p
        dxdy = pltpu.roll(dd, 1, 0) - pltpu.roll(dd, neg_h, 0)
        dxdz = pltpu.roll(dd, 1, 1) - pltpu.roll(dd, neg_w, 1)
        dydz = pltpu.roll(dh, 1, 1) - pltpu.roll(dh, neg_w, 1)
        terms = (ddx, ddy, ddz, dxdy, dydz, dxdz)
        if use_l2:
            return [fold(jnp.where(mask_hw, t * t, 0.0)) for t in terms]
        return [fold(jnp.where(mask_hw, jnp.abs(t), 0.0)) for t in terms]

    def kernel(x_ref, out_ref, *scratch):
        # x_ref  : (TD, H_p, W_p)   planes [k*TD, k*TD + TD) of one (n, c) channel
        # out_ref: (48, 128)        rows 8t..8t+7 = lane/sublane partials of term t
        # scratch: () when KT == 1, else (carry_ref (2, H_p, W_p),) = trailing 2 planes
        #          of the previous D step (halo carried across grid steps).
        h_id = lax.broadcasted_iota(jnp.int32, (H_p, W_p), 0)
        w_id = lax.broadcasted_iota(jnp.int32, (H_p, W_p), 1)
        mask_hw = ((h_id >= 1) & (h_id <= H - 2) &
                   (w_id >= 1) & (w_id <= W - 2))

        zero = jnp.zeros((8, 128), jnp.float32)
        acc = [zero] * 6   # ddx, ddy, ddz, dxdy, dydz, dxdz

        if KT == 1:
            # Whole volume resident: every plane is interior-valid, all indices static,
            # no carry, no gates.
            for d in range(1, D - 1):
                parts = plane_partials(x_ref[d - 1], x_ref[d], x_ref[d + 1], mask_hw)
                acc = [a + pt for a, pt in zip(acc, parts)]
        else:
            carry_ref = scratch[0]
            k = pl.program_id(2)
            d0 = k * TD - 1          # global depth index of local plane i == 0

            def add_gated(accs, parts, valid):
                # Per-plane scalar gate on the reduced partial (select, so garbage /
                # zero-padded planes can never leak into the sums).
                return [a + jnp.where(valid, pt, 0.0) for a, pt in zip(accs, parts)]

            # Local planes 0 and 1 need the carried halo; at k == 0 they are the
            # (non-interior) d = -1, 0 planes and the gate zeroes them.
            acc = add_gated(acc,
                            plane_partials(carry_ref[0], carry_ref[1], x_ref[0], mask_hw),
                            jnp.logical_and(d0 >= 1, d0 <= D - 2))
            acc = add_gated(acc,
                            plane_partials(carry_ref[1], x_ref[0], x_ref[1], mask_hw),
                            jnp.logical_and(d0 + 1 >= 1, d0 + 1 <= D - 2))

            def body(i, accs):
                parts = plane_partials(x_ref[i - 2], x_ref[i - 1], x_ref[i], mask_hw)
                return tuple(add_gated(accs, parts, (d0 + i) <= D - 2))

            if TD <= 16:
                for i in range(2, TD):                       # small: full static unroll
                    acc = list(body(i, tuple(acc)))
            else:
                acc = list(lax.fori_loop(2, TD, body, tuple(acc), unroll=4))

            # Save the trailing two planes as the next D step's halo.
            carry_ref[0] = x_ref[TD - 2]
            carry_ref[1] = x_ref[TD - 1]

        for t in range(6):
            out_ref[8 * t:8 * t + 8, :] = acc[t]

    return kernel


def bending_energy_loss(x, spacing=(1.0, 1.0, 1.0), normalize=True, norm="L2",
                        max_planes_per_step=None):
    """Pallas implementation of BendingEnergyLoss.forward (L1 and L2 norm paths)."""
    N, C, D, H, W = x.shape
    assert C == 3, "BendingEnergyLoss expects an Nx3xDxHxW deformation field"
    assert D >= 3 and H >= 3 and W >= 3
    assert norm in ("L1", "L2")
    x = x.astype(jnp.float32)

    # Pad H/W up to sublane/lane multiples; padded rows/cols are excluded by the
    # in-kernel interior mask so the zeros never reach the sums.
    H_p = max(8, _round_up(H, 8))
    W_p = max(128, _round_up(W, 128))

    vmem_limit = _vmem_limit_bytes()
    plane_bytes = H_p * W_p * 4
    cap = max(2, min(64, (vmem_limit // 3) // plane_bytes))   # ~1/3 budget for the 2x-buffered block
    if max_planes_per_step is not None:
        cap = max(2, min(cap, int(max_planes_per_step)))
    TD = _choose_td(D, cap)
    KT = pl.cdiv(D, TD)
    D_p = KT * TD

    if (H_p != H) or (W_p != W) or (D_p != D):
        x = jnp.pad(x, ((0, 0), (0, 0), (0, D_p - D), (0, H_p - H), (0, W_p - W)))

    kernel = _make_kernel(TD=TD, KT=KT, D=D, H=H, W=W, H_p=H_p, W_p=W_p,
                          use_l2=(norm == "L2"))

    if KT == 1:
        grid = (N, C)
        in_specs = [pl.BlockSpec((None, None, D_p, H_p, W_p),
                                 lambda n, c: (n, c, 0, 0, 0))]
        out_specs = pl.BlockSpec((None, None, None, 48, 128),
                                 lambda n, c: (n, c, 0, 0, 0))
        scratch = []
        dims = ("parallel", "parallel")
    else:
        grid = (N, C, KT)
        in_specs = [pl.BlockSpec((None, None, TD, H_p, W_p),
                                 lambda n, c, k: (n, c, k, 0, 0))]
        out_specs = pl.BlockSpec((None, None, None, 48, 128),
                                 lambda n, c, k: (n, c, k, 0, 0))
        scratch = [pltpu.VMEM((2, H_p, W_p), jnp.float32)]     # carried D halo
        dims = ("parallel", "parallel", "arbitrary")

    out = pl.pallas_call(
        kernel,
        out_shape=jax.ShapeDtypeStruct((N, C, KT, 48, 128), jnp.float32),
        grid=grid,
        in_specs=in_specs,
        out_specs=out_specs,
        scratch_shapes=scratch,
        compiler_params=pltpu.CompilerParams(
            dimension_semantics=dims,
            vmem_limit_bytes=vmem_limit),
    )(x)

    # Tiny cross-step / cross-lane reduction + spacing / spatial scaling in plain JAX.
    sums = out.reshape(N, C, KT, 6, 8, 128).sum(axis=(2, 4, 5))   # (N, C, 6)
    n_interior = (D - 2) * (H - 2) * (W - 2)
    means = sums / jnp.float32(n_interior)

    weights = jnp.asarray([1.0, 1.0, 1.0, 2.0, 2.0, 2.0], jnp.float32)
    if norm == "L2":
        sp = jnp.asarray(spacing, jnp.float32)
        if normalize:
            sp = sp / sp.min()
        sdim = jnp.asarray([D, H, W], jnp.float32)
        if normalize:
            sdim = sdim / sdim.min()
        scales = jnp.stack([
            (sdim * sp / sp[0] ** 2) ** 2,
            (sdim * sp / sp[1] ** 2) ** 2,
            (sdim * sp / sp[2] ** 2) ** 2,
            (sdim * sp / (sp[0] * sp[1])) ** 2,
            (sdim * sp / (sp[1] * sp[2])) ** 2,
            (sdim * sp / (sp[2] * sp[0])) ** 2,
        ], axis=0)                                    # (6, C=3)
        means = means * scales.T[None, :, :]          # (N, C, 6)
    per_term = means.mean(axis=(0, 1))                # (6,)
    return jnp.sum(per_term * weights) / 9.0


def _reference_loss(x, spacing=(1.0, 1.0, 1.0), normalize=True, norm="L2"):
    """Pure-JAX port of the PyTorch forward, for validation."""
    x = x.astype(jnp.float32)
    N, C, D, H, W = x.shape
    sp = jnp.asarray(spacing, jnp.float32)
    if normalize:
        sp = sp / sp.min()
    sdim = jnp.asarray([D, H, W], jnp.float32)
    if normalize:
        sdim = sdim / sdim.min()

    c = x[:, :, 1:-1, 1:-1, 1:-1]
    ddx = jnp.abs(x[:, :, 2:, 1:-1, 1:-1] + x[:, :, :-2, 1:-1, 1:-1] - 2 * c).reshape(N, C, -1)
    ddy = jnp.abs(x[:, :, 1:-1, 2:, 1:-1] + x[:, :, 1:-1, :-2, 1:-1] - 2 * c).reshape(N, C, -1)
    ddz = jnp.abs(x[:, :, 1:-1, 1:-1, 2:] + x[:, :, 1:-1, 1:-1, :-2] - 2 * c).reshape(N, C, -1)
    dxdy = jnp.abs(x[:, :, 2:, 2:, 1:-1] + x[:, :, :-2, :-2, 1:-1]
                   - x[:, :, 2:, :-2, 1:-1] - x[:, :, :-2, 2:, 1:-1]).reshape(N, C, -1)
    dydz = jnp.abs(x[:, :, 1:-1, 2:, 2:] + x[:, :, 1:-1, :-2, :-2]
                   - x[:, :, 1:-1, 2:, :-2] - x[:, :, 1:-1, :-2, 2:]).reshape(N, C, -1)
    dxdz = jnp.abs(x[:, :, 2:, 1:-1, 2:] + x[:, :, :-2, 1:-1, :-2]
                   - x[:, :, 2:, 1:-1, :-2] - x[:, :, :-2, 1:-1, 2:]).reshape(N, C, -1)

    if norm == "L2":
        ddx = (ddx ** 2).mean(2) * (sdim * sp / sp[0] ** 2) ** 2
        ddy = (ddy ** 2).mean(2) * (sdim * sp / sp[1] ** 2) ** 2
        ddz = (ddz ** 2).mean(2) * (sdim * sp / sp[2] ** 2) ** 2
        dxdy = (dxdy ** 2).mean(2) * (sdim * sp / (sp[0] * sp[1])) ** 2
        dydz = (dydz ** 2).mean(2) * (sdim * sp / (sp[1] * sp[2])) ** 2
        dxdz = (dxdz ** 2).mean(2) * (sdim * sp / (sp[2] * sp[0])) ** 2
    return (ddx.mean() + ddy.mean() + ddz.mean()
            + 2 * dxdy.mean() + 2 * dydz.mean() + 2 * dxdz.mean()) / 9.0


if __name__ == "__main__":
    key = jax.random.PRNGKey(0)
    k1, k2 = jax.random.split(key)

    # Nx3xDxHxW deformation field; lane-dense W=128, sublane-aligned H=16, small D.
    x_small = jax.random.normal(k1, (2, 3, 10, 16, 128), dtype=jnp.float32)

    def check(got, want, name, tol=2e-3):
        got = float(jax.block_until_ready(got))
        want = float(want)
        assert abs(got - want) <= tol * max(1.0, abs(want)), f"{name}: {got} vs {want}"

    # 1) Default path: whole-D slab per (n, c) grid step (TD = D, KT = 1).
    check(bending_energy_loss(x_small, spacing=(1.0, 1.5, 2.0)),
          _reference_loss(x_small, spacing=(1.0, 1.5, 2.0)), "L2/whole-slab")

    # 2) Streamed-D path with carried halo + zero-padded tail tile (TD = 4, KT = 3).
    check(bending_energy_loss(x_small, max_planes_per_step=4),
          _reference_loss(x_small), "L2/streamed-tail")

    # 3) Streamed-D path exercising the fori_loop plane loop (TD = 20 > 16, KT = 2).
    x_deep = jax.random.normal(k2, (1, 3, 40, 16, 128), dtype=jnp.float32)
    check(bending_energy_loss(x_deep, max_planes_per_step=20),
          _reference_loss(x_deep), "L2/streamed-fori")

    # 4) L1 norm path.
    check(bending_energy_loss(x_small, norm="L1"),
          _reference_loss(x_small, norm="L1"), "L1/whole-slab")

    print("KERNEL_OK")
</pallas_src>

<mosaic_0001>
module attributes {stable_mosaic.version = 11 : i64} {
  func.func @kernel(%arg0: i32, %arg1: i32, %arg2: memref<1x1x10x16x128xf32, #tpu.memory_space<vmem>>, %arg3: memref<1x1x1x48x128xf32, #tpu.memory_space<vmem>>) attributes {dimension_semantics = [#tpu.dimension_semantics<parallel>, #tpu.dimension_semantics<parallel>], iteration_bounds = array<i64: 2, 3>, scalar_prefetch = 0 : i64, scratch_operands = 0 : i64, tpu.core_type = #tpu.core_type<tc>, window_params = [{transform_indices = @transform_0, window_bounds = array<i64: 1, 1, 10, 16, 128>}, {transform_indices = @transform_1, window_bounds = array<i64: 1, 1, 1, 48, 128>}]} {
    %0 = tpu.iota {dimensions = array<i32: 0>} : vector<16x128xi32>
    %1 = tpu.iota {dimensions = array<i32: 1>} : vector<16x128xi32>
    %c1_i32 = arith.constant 1 : i32
    %2 = vector.broadcast %c1_i32 : i32 to vector<16x128xi32>
    %3 = arith.cmpi sge, %0, %2 : vector<16x128xi32>
    %c14_i32 = arith.constant 14 : i32
    %4 = vector.broadcast %c14_i32 : i32 to vector<16x128xi32>
    %5 = arith.cmpi sle, %0, %4 : vector<16x128xi32>
    %6 = arith.andi %3, %5 : vector<16x128xi1>
    %c1_i32_0 = arith.constant 1 : i32
    %7 = vector.broadcast %c1_i32_0 : i32 to vector<16x128xi32>
    %8 = arith.cmpi sge, %1, %7 : vector<16x128xi32>
    %9 = arith.andi %6, %8 : vector<16x128xi1>
    %c126_i32 = arith.constant 126 : i32
    %10 = vector.broadcast %c126_i32 : i32 to vector<16x128xi32>
    %11 = arith.cmpi sle, %1, %10 : vector<16x128xi32>
    %12 = arith.andi %9, %11 : vector<16x128xi1>
    %cst = arith.constant 0.000000e+00 : f32
    %13 = vector.broadcast %cst : f32 to vector<8x128xf32>
    %c0 = arith.constant 0 : index
    %c0_1 = arith.constant 0 : index
    %c0_2 = arith.constant 0 : index
    %c0_3 = arith.constant 0 : index
    %c0_4 = arith.constant 0 : index
    %14 = vector.load %arg2[%c0, %c0_1, %c0_2, %c0_3, %c0_4] : memref<1x1x10x16x128xf32, #tpu.memory_space<vmem>>, vector<1x1x1x16x128xf32>
    %15 = vector.shape_cast %14 : vector<1x1x1x16x128xf32> to vector<16x128xf32>
    %c0_5 = arith.constant 0 : index
    %c0_6 = arith.constant 0 : index
    %c1 = arith.constant 1 : index
    %c0_7 = arith.constant 0 : index
    %c0_8 = arith.constant 0 : index
    %16 = vector.load %arg2[%c0_5, %c0_6, %c1, %c0_7, %c0_8] : memref<1x1x10x16x128xf32, #tpu.memory_space<vmem>>, vector<1x1x1x16x128xf32>
    %17 = vector.shape_cast %16 : vector<1x1x1x16x128xf32> to vector<16x128xf32>
    %c0_9 = arith.constant 0 : index
    %c0_10 = arith.constant 0 : index
    %c2 = arith.constant 2 : index
    %c0_11 = arith.constant 0 : index
    %c0_12 = arith.constant 0 : index
    %18 = vector.load %arg2[%c0_9, %c0_10, %c2, %c0_11, %c0_12] : memref<1x1x10x16x128xf32, #tpu.memory_space<vmem>>, vector<1x1x1x16x128xf32>
    %19 = vector.shape_cast %18 : vector<1x1x1x16x128xf32> to vector<16x128xf32>
    %cst_13 = arith.constant 2.000000e+00 : f32
    %20 = vector.broadcast %cst_13 : f32 to vector<16x128xf32>
    %21 = arith.mulf %20, %17 : vector<16x128xf32>
    %c1_i32_14 = arith.constant 1 : i32
    %22 = tpu.dynamic_rotate %17 by %c1_i32_14 dim 0 : vector<16x128xf32>, i32 -> vector<16x128xf32>
    %c15_i32 = arith.constant 15 : i32
    %23 = tpu.dynamic_rotate %17 by %c15_i32 dim 0 : vector<16x128xf32>, i32 -> vector<16x128xf32>
    %c1_i32_15 = arith.constant 1 : i32
    %24 = tpu.dynamic_rotate %17 by %c1_i32_15 dim 1 : vector<16x128xf32>, i32 -> vector<16x128xf32>
    %c127_i32 = arith.constant 127 : i32
    %25 = tpu.dynamic_rotate %17 by %c127_i32 dim 1 : vector<16x128xf32>, i32 -> vector<16x128xf32>
    %26 = arith.subf %19, %15 : vector<16x128xf32>
    %27 = arith.subf %22, %23 : vector<16x128xf32>
    %28 = arith.addf %19, %15 : vector<16x128xf32>
    %29 = arith.subf %28, %21 : vector<16x128xf32>
    %30 = arith.addf %22, %23 : vector<16x128xf32>
    %31 = arith.subf %30, %21 : vector<16x128xf32>
    %32 = arith.addf %24, %25 : vector<16x128xf32>
    %33 = arith.subf %32, %21 : vector<16x128xf32>
    %c1_i32_16 = arith.constant 1 : i32
    %34 = tpu.dynamic_rotate %26 by %c1_i32_16 dim 0 : vector<16x128xf32>, i32 -> vector<16x128xf32>
    %c15_i32_17 = arith.constant 15 : i32
    %35 = tpu.dynamic_rotate %26 by %c15_i32_17 dim 0 : vector<16x128xf32>, i32 -> vector<16x128xf32>
    %36 = arith.subf %34, %35 : vector<16x128xf32>
    %c1_i32_18 = arith.constant 1 : i32
    %37 = tpu.dynamic_rotate %26 by %c1_i32_18 dim 1 : vector<16x128xf32>, i32 -> vector<16x128xf32>
    %c127_i32_19 = arith.constant 127 : i32
    %38 = tpu.dynamic_rotate %26 by %c127_i32_19 dim 1 : vector<16x128xf32>, i32 -> vector<16x128xf32>
    %39 = arith.subf %37, %38 : vector<16x128xf32>
    %c1_i32_20 = arith.constant 1 : i32
    %40 = tpu.dynamic_rotate %27 by %c1_i32_20 dim 1 : vector<16x128xf32>, i32 -> vector<16x128xf32>
    %c127_i32_21 = arith.constant 127 : i32
    %41 = tpu.dynamic_rotate %27 by %c127_i32_21 dim 1 : vector<16x128xf32>, i32 -> vector<16x128xf32>
    %42 = arith.subf %40, %41 : vector<16x128xf32>
    %43 = arith.mulf %29, %29 : vector<16x128xf32>
    %cst_22 = arith.constant 0.000000e+00 : f32
    %44 = vector.broadcast %cst_22 : f32 to vector<16x128xf32>
    %45 = arith.select %12, %43, %44 : vector<16x128xi1>, vector<16x128xf32>
    %46 = vector.extract_strided_slice %45 {offsets = [0, 0], sizes = [8, 128], strides = [1, 1]} : vector<16x128xf32> to vector<8x128xf32>
    %47 = vector.extract_strided_slice %45 {offsets = [8, 0], sizes = [8, 128], strides = [1, 1]} : vector<16x128xf32> to vector<8x128xf32>
    %48 = arith.addf %46, %47 : vector<8x128xf32>
    %49 = arith.mulf %31, %31 : vector<16x128xf32>
    %cst_23 = arith.constant 0.000000e+00 : f32
    %50 = vector.broadcast %cst_23 : f32 to vector<16x128xf32>
    %51 = arith.select %12, %49, %50 : vector<16x128xi1>, vector<16x128xf32>
    %52 = vector.extract_strided_slice %51 {offsets = [0, 0], sizes = [8, 128], strides = [1, 1]} : vector<16x128xf32> to vector<8x128xf32>
    %53 = vector.extract_strided_slice %51 {offsets = [8, 0], sizes = [8, 128], strides = [1, 1]} : vector<16x128xf32> to vector<8x128xf32>
    %54 = arith.addf %52, %53 : vector<8x128xf32>
    %55 = arith.mulf %33, %33 : vector<16x128xf32>
    %cst_24 = arith.constant 0.000000e+00 : f32
    %56 = vector.broadcast %cst_24 : f32 to vector<16x128xf32>
    %57 = arith.select %12, %55, %56 : vector<16x128xi1>, vector<16x128xf32>
    %58 = vector.extract_strided_slice %57 {offsets = [0, 0], sizes = [8, 128], strides = [1, 1]} : vector<16x128xf32> to vector<8x128xf32>
    %59 = vector.extract_strided_slice %57 {offsets = [8, 0], sizes = [8, 128], strides = [1, 1]} : vector<16x128xf32> to vector<8x128xf32>
    %60 = arith.addf %58, %59 : vector<8x128xf32>
    %61 = arith.mulf %36, %36 : vector<16x128xf32>
    %cst_25 = arith.constant 0.000000e+00 : f32
    %62 = vector.broadcast %cst_25 : f32 to vector<16x128xf32>
    %63 = arith.select %12, %61, %62 : vector<16x128xi1>, vector<16x128xf32>
    %64 = vector.extract_strided_slice %63 {offsets = [0, 0], sizes = [8, 128], strides = [1, 1]} : vector<16x128xf32> to vector<8x128xf32>
    %65 = vector.extract_strided_slice %63 {offsets = [8, 0], sizes = [8, 128], strides = [1, 1]} : vector<16x128xf32> to vector<8x128xf32>
    %66 = arith.addf %64, %65 : vector<8x128xf32>
    %67 = arith.mulf %42, %42 : vector<16x128xf32>
    %cst_26 = arith.constant 0.000000e+00 : f32
    %68 = vector.broadcast %cst_26 : f32 to vector<16x128xf32>
    %69 = arith.select %12, %67, %68 : vector<16x128xi1>, vector<16x128xf32>
    %70 = vector.extract_strided_slice %69 {offsets = [0, 0], sizes = [8, 128], strides = [1, 1]} : vector<16x128xf32> to vector<8x128xf32>
    %71 = vector.extract_strided_slice %69 {offsets = [8, 0], sizes = [8, 128], strides = [1, 1]} : vector<16x128xf32> to vector<8x128xf32>
    %72 = arith.addf %70, %71 : vector<8x128xf32>
    %73 = arith.mulf %39, %39 : vector<16x128xf32>
    %cst_27 = arith.constant 0.000000e+00 : f32
    %74 = vector.broadcast %cst_27 : f32 to vector<16x128xf32>
    %75 = arith.select %12, %73, %74 : vector<16x128xi1>, vector<16x128xf32>
    %76 = vector.extract_strided_slice %75 {offsets = [0, 0], sizes = [8, 128], strides = [1, 1]} : vector<16x128xf32> to vector<8x128xf32>
    %77 = vector.extract_strided_slice %75 {offsets = [8, 0], sizes = [8, 128], strides = [1, 1]} : vector<16x128xf32> to vector<8x128xf32>
    %78 = arith.addf %76, %77 : vector<8x128xf32>
    %79 = arith.addf %13, %48 : vector<8x128xf32>
    %80 = arith.addf %13, %54 : vector<8x128xf32>
    %81 = arith.addf %13, %60 : vector<8x128xf32>
    %82 = arith.addf %13, %66 : vector<8x128xf32>
    %83 = arith.addf %13, %72 : vector<8x128xf32>
    %84 = arith.addf %13, %78 : vector<8x128xf32>
    %c0_28 = arith.constant 0 : index
    %c0_29 = arith.constant 0 : index
    %c1_30 = arith.constant 1 : index
    %c0_31 = arith.constant 0 : index
    %c0_32 = arith.constant 0 : index
    %85 = vector.load %arg2[%c0_28, %c0_29, %c1_30, %c0_31, %c0_32] : memref<1x1x10x16x128xf32, #tpu.memory_space<vmem>>, vector<1x1x1x16x128xf32>
    %86 = vector.shape_cast %85 : vector<1x1x1x16x128xf32> to vector<16x128xf32>
    %c0_33 = arith.constant 0 : index
    %c0_34 = arith.constant 0 : index
    %c2_35 = arith.constant 2 : index
    %c0_36 = arith.constant 0 : index
    %c0_37 = arith.constant 0 : index
    %87 = vector.load %arg2[%c0_33, %c0_34, %c2_35, %c0_36, %c0_37] : memref<1x1x10x16x128xf32, #tpu.memory_space<vmem>>, vector<1x1x1x16x128xf32>
    %88 = vector.shape_cast %87 : vector<1x1x1x16x128xf32> to vector<16x128xf32>
    %c0_38 = arith.constant 0 : index
    %c0_39 = arith.constant 0 : index
    %c3 = arith.constant 3 : index
    %c0_40 = arith.constant 0 : index
    %c0_41 = arith.constant 0 : index
    %89 = vector.load %arg2[%c0_38, %c0_39, %c3, %c0_40, %c0_41] : memref<1x1x10x16x128xf32, #tpu.memory_space<vmem>>, vector<1x1x1x16x128xf32>
    %90 = vector.shape_cast %89 : vector<1x1x1x16x128xf32> to vector<16x128xf32>
    %cst_42 = arith.constant 2.000000e+00 : f32
    %91 = vector.broadcast %cst_42 : f32 to vector<16x128xf32>
    %92 = arith.mulf %91, %88 : vector<16x128xf32>
    %c1_i32_43 = arith.constant 1 : i32
    %93 = tpu.dynamic_rotate %88 by %c1_i32_43 dim 0 : vector<16x128xf32>, i32 -> vector<16x128xf32>
    %c15_i32_44 = arith.constant 15 : i32
    %94 = tpu.dynamic_rotate %88 by %c15_i32_44 dim 0 : vector<16x128xf32>, i32 -> vector<16x128xf32>
    %c1_i32_45 = arith.constant 1 : i32
    %95 = tpu.dynamic_rotate %88 by %c1_i32_45 dim 1 : vector<16x128xf32>, i32 -> vector<16x128xf32>
    %c127_i32_46 = arith.constant 127 : i32
    %96 = tpu.dynamic_rotate %88 by %c127_i32_46 dim 1 : vector<16x128xf32>, i32 -> vector<16x128xf32>
    %97 = arith.subf %90, %86 : vector<16x128xf32>
    %98 = arith.subf %93, %94 : vector<16x128xf32>
    %99 = arith.addf %90, %86 : vector<16x128xf32>
    %100 = arith.subf %99, %92 : vector<16x128xf32>
    %101 = arith.addf %93, %94 : vector<16x128xf32>
    %102 = arith.subf %101, %92 : vector<16x128xf32>
    %103 = arith.addf %95, %96 : vector<16x128xf32>
    %104 = arith.subf %103, %92 : vector<16x128xf32>
    %c1_i32_47 = arith.constant 1 : i32
    %105 = tpu.dynamic_rotate %97 by %c1_i32_47 dim 0 : vector<16x128xf32>, i32 -> vector<16x128xf32>
    %c15_i32_48 = arith.constant 15 : i32
    %106 = tpu.dynamic_rotate %97 by %c15_i32_48 dim 0 : vector<16x128xf32>, i32 -> vector<16x128xf32>
    %107 = arith.subf %105, %106 : vector<16x128xf32>
    %c1_i32_49 = arith.constant 1 : i32
    %108 = tpu.dynamic_rotate %97 by %c1_i32_49 dim 1 : vector<16x128xf32>, i32 -> vector<16x128xf32>
    %c127_i32_50 = arith.constant 127 : i32
    %109 = tpu.dynamic_rotate %97 by %c127_i32_50 dim 1 : vector<16x128xf32>, i32 -> vector<16x128xf32>
    %110 = arith.subf %108, %109 : vector<16x128xf32>
    %c1_i32_51 = arith.constant 1 : i32
    %111 = tpu.dynamic_rotate %98 by %c1_i32_51 dim 1 : vector<16x128xf32>, i32 -> vector<16x128xf32>
    %c127_i32_52 = arith.constant 127 : i32
    %112 = tpu.dynamic_rotate %98 by %c127_i32_52 dim 1 : vector<16x128xf32>, i32 -> vector<16x128xf32>
    %113 = arith.subf %111, %112 : vector<16x128xf32>
    %114 = arith.mulf %100, %100 : vector<16x128xf32>
    %cst_53 = arith.constant 0.000000e+00 : f32
    %115 = vector.broadcast %cst_53 : f32 to vector<16x128xf32>
    %116 = arith.select %12, %114, %115 : vector<16x128xi1>, vector<16x128xf32>
    %117 = vector.extract_strided_slice %116 {offsets = [0, 0], sizes = [8, 128], strides = [1, 1]} : vector<16x128xf32> to vector<8x128xf32>
    %118 = vector.extract_strided_slice %116 {offsets = [8, 0], sizes = [8, 128], strides = [1, 1]} : vector<16x128xf32> to vector<8x128xf32>
    %119 = arith.addf %117, %118 : vector<8x128xf32>
    %120 = arith.mulf %102, %102 : vector<16x128xf32>
    %cst_54 = arith.constant 0.000000e+00 : f32
    %121 = vector.broadcast %cst_54 : f32 to vector<16x128xf32>
    %122 = arith.select %12, %120, %121 : vector<16x128xi1>, vector<16x128xf32>
    %123 = vector.extract_strided_slice %122 {offsets = [0, 0], sizes = [8, 128], strides = [1, 1]} : vector<16x128xf32> to vector<8x128xf32>
    %124 = vector.extract_strided_slice %122 {offsets = [8, 0], sizes = [8, 128], strides = [1, 1]} : vector<16x128xf32> to vector<8x128xf32>
    %125 = arith.addf %123, %124 : vector<8x128xf32>
    %126 = arith.mulf %104, %104 : vector<16x128xf32>
    %cst_55 = arith.constant 0.000000e+00 : f32
    %127 = vector.broadcast %cst_55 : f32 to vector<16x128xf32>
    %128 = arith.select %12, %126, %127 : vector<16x128xi1>, vector<16x128xf32>
    %129 = vector.extract_strided_slice %128 {offsets = [0, 0], sizes = [8, 128], strides = [1, 1]} : vector<16x128xf32> to vector<8x128xf32>
    %130 = vector.extract_strided_slice %128 {offsets = [8, 0], sizes = [8, 128], strides = [1, 1]} : vector<16x128xf32> to vector<8x128xf32>
    %131 = arith.addf %129, %130 : vector<8x128xf32>
    %132 = arith.mulf %107, %107 : vector<16x128xf32>
    %cst_56 = arith.constant 0.000000e+00 : f32
    %133 = vector.broadcast %cst_56 : f32 to vector<16x128xf32>
    %134 = arith.select %12, %132, %133 : vector<16x128xi1>, vector<16x128xf32>
    %135 = vector.extract_strided_slice %134 {offsets = [0, 0], sizes = [8, 128], strides = [1, 1]} : vector<16x128xf32> to vector<8x128xf32>
    %136 = vector.extract_strided_slice %134 {offsets = [8, 0], sizes = [8, 128], strides = [1, 1]} : vector<16x128xf32> to vector<8x128xf32>
    %137 = arith.addf %135, %136 : vector<8x128xf32>
    %138 = arith.mulf %113, %113 : vector<16x128xf32>
    %cst_57 = arith.constant 0.000000e+00 : f32
    %139 = vector.broadcast %cst_57 : f32 to vector<16x128xf32>
    %140 = arith.select %12, %138, %139 : vector<16x128xi1>, vector<16x128xf32>
    %141 = vector.extract_strided_slice %140 {offsets = [0, 0], sizes = [8, 128], strides = [1, 1]} : vector<16x128xf32> to vector<8x128xf32>
    %142 = vector.extract_strided_slice %140 {offsets = [8, 0], sizes = [8, 128], strides = [1, 1]} : vector<16x128xf32> to vector<8x128xf32>
    %143 = arith.addf %141, %142 : vector<8x128xf32>
    %144 = arith.mulf %110, %110 : vector<16x128xf32>
    %cst_58 = arith.constant 0.000000e+00 : f32
    %145 = vector.broadcast %cst_58 : f32 to vector<16x128xf32>
    %146 = arith.select %12, %144, %145 : vector<16x128xi1>, vector<16x128xf32>
    %147 = vector.extract_strided_slice %146 {offsets = [0, 0], sizes = [8, 128], strides = [1, 1]} : vector<16x128xf32> to vector<8x128xf32>
    %148 = vector.extract_strided_slice %146 {offsets = [8, 0], sizes = [8, 128], strides = [1, 1]} : vector<16x128xf32> to vector<8x128xf32>
    %149 = arith.addf %147, %148 : vector<8x128xf32>
    %150 = arith.addf %79, %119 : vector<8x128xf32>
    %151 = arith.addf %80, %125 : vector<8x128xf32>
    %152 = arith.addf %81, %131 : vector<8x128xf32>
    %153 = arith.addf %82, %137 : vector<8x128xf32>
    %154 = arith.addf %83, %143 : vector<8x128xf32>
    %155 = arith.addf %84, %149 : vector<8x128xf32>
    %c0_59 = arith.constant 0 : index
    %c0_60 = arith.constant 0 : index
    %c2_61 = arith.constant 2 : index
    %c0_62 = arith.constant 0 : index
    %c0_63 = arith.constant 0 : index
    %156 = vector.load %arg2[%c0_59, %c0_60, %c2_61, %c0_62, %c0_63] : memref<1x1x10x16x128xf32, #tpu.memory_space<vmem>>, vector<1x1x1x16x128xf32>
    %157 = vector.shape_cast %156 : vector<1x1x1x16x128xf32> to vector<16x128xf32>
    %c0_64 = arith.constant 0 : index
    %c0_65 = arith.constant 0 : index
    %c3_66 = arith.constant 3 : index
    %c0_67 = arith.constant 0 : index
    %c0_68 = arith.constant 0 : index
    %158 = vector.load %arg2[%c0_64, %c0_65, %c3_66, %c0_67, %c0_68] : memref<1x1x10x16x128xf32, #tpu.memory_space<vmem>>, vector<1x1x1x16x128xf32>
    %159 = vector.shape_cast %158 : vector<1x1x1x16x128xf32> to vector<16x128xf32>
    %c0_69 = arith.constant 0 : index
    %c0_70 = arith.constant 0 : index
    %c4 = arith.constant 4 : index
    %c0_71 = arith.constant 0 : index
    %c0_72 = arith.constant 0 : index
    %160 = vector.load %arg2[%c0_69, %c0_70, %c4, %c0_71, %c0_72] : memref<1x1x10x16x128xf32, #tpu.memory_space<vmem>>, vector<1x1x1x16x128xf32>
    %161 = vector.shape_cast %160 : vector<1x1x1x16x128xf32> to vector<16x128xf32>
    %cst_73 = arith.constant 2.000000e+00 : f32
    %162 = vector.broadcast %cst_73 : f32 to vector<16x128xf32>
    %163 = arith.mulf %162, %159 : vector<16x128xf32>
    %c1_i32_74 = arith.constant 1 : i32
    %164 = tpu.dynamic_rotate %159 by %c1_i32_74 dim 0 : vector<16x128xf32>, i32 -> vector<16x128xf32>
    %c15_i32_75 = arith.constant 15 : i32
    %165 = tpu.dynamic_rotate %159 by %c15_i32_75 dim 0 : vector<16x128xf32>, i32 -> vector<16x128xf32>
    %c1_i32_76 = arith.constant 1 : i32
    %166 = tpu.dynamic_rotate %159 by %c1_i32_76 dim 1 : vector<16x128xf32>, i32 -> vector<16x128xf32>
    %c127_i32_77 = arith.constant 127 : i32
    %167 = tpu.dynamic_rotate %159 by %c127_i32_77 dim 1 : vector<16x128xf32>, i32 -> vector<16x128xf32>
    %168 = arith.subf %161, %157 : vector<16x128xf32>
    %169 = arith.subf %164, %165 : vector<16x128xf32>
    %170 = arith.addf %161, %157 : vector<16x128xf32>
    %171 = arith.subf %170, %163 : vector<16x128xf32>
    %172 = arith.addf %164, %165 : vector<16x128xf32>
    %173 = arith.subf %172, %163 : vector<16x128xf32>
    %174 = arith.addf %166, %167 : vector<16x128xf32>
    %175 = arith.subf %174, %163 : vector<16x128xf32>
    %c1_i32_78 = arith.constant 1 : i32
    %176 = tpu.dynamic_rotate %168 by %c1_i32_78 dim 0 : vector<16x128xf32>, i32 -> vector<16x128xf32>
    %c15_i32_79 = arith.constant 15 : i32
    %177 = tpu.dynamic_rotate %168 by %c15_i32_79 dim 0 : vector<16x128xf32>, i32 -> vector<16x128xf32>
    %178 = arith.subf %176, %177 : vector<16x128xf32>
    %c1_i32_80 = arith.constant 1 : i32
    %179 = tpu.dynamic_rotate %168 by %c1_i32_80 dim 1 : vector<16x128xf32>, i32 -> vector<16x128xf32>
    %c127_i32_81 = arith.constant 127 : i32
    %180 = tpu.dynamic_rotate %168 by %c127_i32_81 dim 1 : vector<16x128xf32>, i32 -> vector<16x128xf32>
    %181 = arith.subf %179, %180 : vector<16x128xf32>
    %c1_i32_82 = arith.constant 1 : i32
    %182 = tpu.dynamic_rotate %169 by %c1_i32_82 dim 1 : vector<16x128xf32>, i32 -> vector<16x128xf32>
    %c127_i32_83 = arith.constant 127 : i32
    %183 = tpu.dynamic_rotate %169 by %c127_i32_83 dim 1 : vector<16x128xf32>, i32 -> vector<16x128xf32>
    %184 = arith.subf %182, %183 : vector<16x128xf32>
    %185 = arith.mulf %171, %171 : vector<16x128xf32>
    %cst_84 = arith.constant 0.000000e+00 : f32
    %186 = vector.broadcast %cst_84 : f32 to vector<16x128xf32>
    %187 = arith.select %12, %185, %186 : vector<16x128xi1>, vector<16x128xf32>
    %188 = vector.extract_strided_slice %187 {offsets = [0, 0], sizes = [8, 128], strides = [1, 1]} : vector<16x128xf32> to vector<8x128xf32>
    %189 = vector.extract_strided_slice %187 {offsets = [8, 0], sizes = [8, 128], strides = [1, 1]} : vector<16x128xf32> to vector<8x128xf32>
    %190 = arith.addf %188, %189 : vector<8x128xf32>
    %191 = arith.mulf %173, %173 : vector<16x128xf32>
    %cst_85 = arith.constant 0.000000e+00 : f32
    %192 = vector.broadcast %cst_85 : f32 to vector<16x128xf32>
    %193 = arith.select %12, %191, %192 : vector<16x128xi1>, vector<16x128xf32>
    %194 = vector.extract_strided_slice %193 {offsets = [0, 0], sizes = [8, 128], strides = [1, 1]} : vector<16x128xf32> to vector<8x128xf32>
    %195 = vector.extract_strided_slice %193 {offsets = [8, 0], sizes = [8, 128], strides = [1, 1]} : vector<16x128xf32> to vector<8x128xf32>
    %196 = arith.addf %194, %195 : vector<8x128xf32>
    %197 = arith.mulf %175, %175 : vector<16x128xf32>
    %cst_86 = arith.constant 0.000000e+00 : f32
    %198 = vector.broadcast %cst_86 : f32 to vector<16x128xf32>
    %199 = arith.select %12, %197, %198 : vector<16x128xi1>, vector<16x128xf32>
    %200 = vector.extract_strided_slice %199 {offsets = [0, 0], sizes = [8, 128], strides = [1, 1]} : vector<16x128xf32> to vector<8x128xf32>
    %201 = vector.extract_strided_slice %199 {offsets = [8, 0], sizes = [8, 128], strides = [1, 1]} : vector<16x128xf32> to vector<8x128xf32>
    %202 = arith.addf %200, %201 : vector<8x128xf32>
    %203 = arith.mulf %178, %178 : vector<16x128xf32>
    %cst_87 = arith.constant 0.000000e+00 : f32
    %204 = vector.broadcast %cst_87 : f32 to vector<16x128xf32>
    %205 = arith.select %12, %203, %204 : vector<16x128xi1>, vector<16x128xf32>
    %206 = vector.extract_strided_slice %205 {offsets = [0, 0], sizes = [8, 128], strides = [1, 1]} : vector<16x128xf32> to vector<8x128xf32>
    %207 = vector.extract_strided_slice %205 {offsets = [8, 0], sizes = [8, 128], strides = [1, 1]} : vector<16x128xf32> to vector<8x128xf32>
    %208 = arith.addf %206, %207 : vector<8x128xf32>
    %209 = arith.mulf %184, %184 : vector<16x128xf32>
    %cst_88 = arith.constant 0.000000e+00 : f32
    %210 = vector.broadcast %cst_88 : f32 to vector<16x128xf32>
    %211 = arith.select %12, %209, %210 : vector<16x128xi1>, vector<16x128xf32>
    %212 = vector.extract_strided_slice %211 {offsets = [0, 0], sizes = [8, 128], strides = [1, 1]} : vector<16x128xf32> to vector<8x128xf32>
    %213 = vector.extract_strided_slice %211 {offsets = [8, 0], sizes = [8, 128], strides = [1, 1]} : vector<16x128xf32> to vector<8x128xf32>
    %214 = arith.addf %212, %213 : vector<8x128xf32>
    %215 = arith.mulf %181, %181 : vector<16x128xf32>
    %cst_89 = arith.constant 0.000000e+00 : f32
    %216 = vector.broadcast %cst_89 : f32 to vector<16x128xf32>
    %217 = arith.select %12, %215, %216 : vector<16x128xi1>, vector<16x128xf32>
    %218 = vector.extract_strided_slice %217 {offsets = [0, 0], sizes = [8, 128], strides = [1, 1]} : vector<16x128xf32> to vector<8x128xf32>
    %219 = vector.extract_strided_slice %217 {offsets = [8, 0], sizes = [8, 128], strides = [1, 1]} : vector<16x128xf32> to vector<8x128xf32>
    %220 = arith.addf %218, %219 : vector<8x128xf32>
    %221 = arith.addf %150, %190 : vector<8x128xf32>
    %222 = arith.addf %151, %196 : vector<8x128xf32>
    %223 = arith.addf %152, %202 : vector<8x128xf32>
    %224 = arith.addf %153, %208 : vector<8x128xf32>
    %225 = arith.addf %154, %214 : vector<8x128xf32>
    %226 = arith.addf %155, %220 : vector<8x128xf32>
    %c0_90 = arith.constant 0 : index
    %c0_91 = arith.constant 0 : index
    %c3_92 = arith.constant 3 : index
    %c0_93 = arith.constant 0 : index
    %c0_94 = arith.constant 0 : index
    %227 = vector.load %arg2[%c0_90, %c0_91, %c3_92, %c0_93, %c0_94] : memref<1x1x10x16x128xf32, #tpu.memory_space<vmem>>, vector<1x1x1x16x128xf32>
    %228 = vector.shape_cast %227 : vector<1x1x1x16x128xf32> to vector<16x128xf32>
    %c0_95 = arith.constant 0 : index
    %c0_96 = arith.constant 0 : index
    %c4_97 = arith.constant 4 : index
    %c0_98 = arith.constant 0 : index
    %c0_99 = arith.constant 0 : index
    %229 = vector.load %arg2[%c0_95, %c0_96, %c4_97, %c0_98, %c0_99] : memref<1x1x10x16x128xf32, #tpu.memory_space<vmem>>, vector<1x1x1x16x128xf32>
    %230 = vector.shape_cast %229 : vector<1x1x1x16x128xf32> to vector<16x128xf32>
    %c0_100 = arith.constant 0 : index
    %c0_101 = arith.constant 0 : index
    %c5 = arith.constant 5 : index
    %c0_102 = arith.constant 0 : index
    %c0_103 = arith.constant 0 : index
    %231 = vector.load %arg2[%c0_100, %c0_101, %c5, %c0_102, %c0_103] : memref<1x1x10x16x128xf32, #tpu.memory_space<vmem>>, vector<1x1x1x16x128xf32>
    %232 = vector.shape_cast %231 : vector<1x1x1x16x128xf32> to vector<16x128xf32>
    %cst_104 = arith.constant 2.000000e+00 : f32
    %233 = vector.broadcast %cst_104 : f32 to vector<16x128xf32>
    %234 = arith.mulf %233, %230 : vector<16x128xf32>
    %c1_i32_105 = arith.constant 1 : i32
    %235 = tpu.dynamic_rotate %230 by %c1_i32_105 dim 0 : vector<16x128xf32>, i32 -> vector<16x128xf32>
    %c15_i32_106 = arith.constant 15 : i32
    %236 = tpu.dynamic_rotate %230 by %c15_i32_106 dim 0 : vector<16x128xf32>, i32 -> vector<16x128xf32>
    %c1_i32_107 = arith.constant 1 : i32
    %237 = tpu.dynamic_rotate %230 by %c1_i32_107 dim 1 : vector<16x128xf32>, i32 -> vector<16x128xf32>
    %c127_i32_108 = arith.constant 127 : i32
    %238 = tpu.dynamic_rotate %230 by %c127_i32_108 dim 1 : vector<16x128xf32>, i32 -> vector<16x128xf32>
    %239 = arith.subf %232, %228 : vector<16x128xf32>
    %240 = arith.subf %235, %236 : vector<16x128xf32>
    %241 = arith.addf %232, %228 : vector<16x128xf32>
    %242 = arith.subf %241, %234 : vector<16x128xf32>
    %243 = arith.addf %235, %236 : vector<16x128xf32>
    %244 = arith.subf %243, %234 : vector<16x128xf32>
    %245 = arith.addf %237, %238 : vector<16x128xf32>
    %246 = arith.subf %245, %234 : vector<16x128xf32>
    %c1_i32_109 = arith.constant 1 : i32
    %247 = tpu.dynamic_rotate %239 by %c1_i32_109 dim 0 : vector<16x128xf32>, i32 -> vector<16x128xf32>
    %c15_i32_110 = arith.constant 15 : i32
    %248 = tpu.dynamic_rotate %239 by %c15_i32_110 dim 0 : vector<16x128xf32>, i32 -> vector<16x128xf32>
    %249 = arith.subf %247, %248 : vector<16x128xf32>
    %c1_i32_111 = arith.constant 1 : i32
    %250 = tpu.dynamic_rotate %239 by %c1_i32_111 dim 1 : vector<16x128xf32>, i32 -> vector<16x128xf32>
    %c127_i32_112 = arith.constant 127 : i32
    %251 = tpu.dynamic_rotate %239 by %c127_i32_112 dim 1 : vector<16x128xf32>, i32 -> vector<16x128xf32>
    %252 = arith.subf %250, %251 : vector<16x128xf32>
    %c1_i32_113 = arith.constant 1 : i32
    %253 = tpu.dynamic_rotate %240 by %c1_i32_113 dim 1 : vector<16x128xf32>, i32 -> vector<16x128xf32>
    %c127_i32_114 = arith.constant 127 : i32
    %254 = tpu.dynamic_rotate %240 by %c127_i32_114 dim 1 : vector<16x128xf32>, i32 -> vector<16x128xf32>
    %255 = arith.subf %253, %254 : vector<16x128xf32>
    %256 = arith.mulf %242, %242 : vector<16x128xf32>
    %cst_115 = arith.constant 0.000000e+00 : f32
    %257 = vector.broadcast %cst_115 : f32 to vector<16x128xf32>
    %258 = arith.select %12, %256, %257 : vector<16x128xi1>, vector<16x128xf32>
    %259 = vector.extract_strided_slice %258 {offsets = [0, 0], sizes = [8, 128], strides = [1, 1]} : vector<16x128xf32> to vector<8x128xf32>
    %260 = vector.extract_strided_slice %258 {offsets = [8, 0], sizes = [8, 128], strides = [1, 1]} : vector<16x128xf32> to vector<8x128xf32>
    %261 = arith.addf %259, %260 : vector<8x128xf32>
    %262 = arith.mulf %244, %244 : vector<16x128xf32>
    %cst_116 = arith.constant 0.000000e+00 : f32
    %263 = vector.broadcast %cst_116 : f32 to vector<16x128xf32>
    %264 = arith.select %12, %262, %263 : vector<16x128xi1>, vector<16x128xf32>
    %265 = vector.extract_strided_slice %264 {offsets = [0, 0], sizes = [8, 128], strides = [1, 1]} : vector<16x128xf32> to vector<8x128xf32>
    %266 = vector.extract_strided_slice %264 {offsets = [8, 0], sizes = [8, 128], strides = [1, 1]} : vector<16x128xf32> to vector<8x128xf32>
    %267 = arith.addf %265, %266 : vector<8x128xf32>
    %268 = arith.mulf %246, %246 : vector<16x128xf32>
    %cst_117 = arith.constant 0.000000e+00 : f32
    %269 = vector.broadcast %cst_117 : f32 to vector<16x128xf32>
    %270 = arith.select %12, %268, %269 : vector<16x128xi1>, vector<16x128xf32>
    %271 = vector.extract_strided_slice %270 {offsets = [0, 0], sizes = [8, 128], strides = [1, 1]} : vector<16x128xf32> to vector<8x128xf32>
    %272 = vector.extract_strided_slice %270 {offsets = [8, 0], sizes = [8, 128], strides = [1, 1]} : vector<16x128xf32> to vector<8x128xf32>
    %273 = arith.addf %271, %272 : vector<8x128xf32>
    %274 = arith.mulf %249, %249 : vector<16x128xf32>
    %cst_118 = arith.constant 0.000000e+00 : f32
    %275 = vector.broadcast %cst_118 : f32 to vector<16x128xf32>
    %276 = arith.select %12, %274, %275 : vector<16x128xi1>, vector<16x128xf32>
    %277 = vector.extract_strided_slice %276 {offsets = [0, 0], sizes = [8, 128], strides = [1, 1]} : vector<16x128xf32> to vector<8x128xf32>
    %278 = vector.extract_strided_slice %276 {offsets = [8, 0], sizes = [8, 128], strides = [1, 1]} : vector<16x128xf32> to vector<8x128xf32>
    %279 = arith.addf %277, %278 : vector<8x128xf32>
    %280 = arith.mulf %255, %255 : vector<16x128xf32>
    %cst_119 = arith.constant 0.000000e+00 : f32
    %281 = vector.broadcast %cst_119 : f32 to vector<16x128xf32>
    %282 = arith.select %12, %280, %281 : vector<16x128xi1>, vector<16x128xf32>
    %283 = vector.extract_strided_slice %282 {offsets = [0, 0], sizes = [8, 128], strides = [1, 1]} : vector<16x128xf32> to vector<8x128xf32>
    %284 = vector.extract_strided_slice %282 {offsets = [8, 0], sizes = [8, 128], strides = [1, 1]} : vector<16x128xf32> to vector<8x128xf32>
    %285 = arith.addf %283, %284 : vector<8x128xf32>
    %286 = arith.mulf %252, %252 : vector<16x128xf32>
    %cst_120 = arith.constant 0.000000e+00 : f32
    %287 = vector.broadcast %cst_120 : f32 to vector<16x128xf32>
    %288 = arith.select %12, %286, %287 : vector<16x128xi1>, vector<16x128xf32>
    %289 = vector.extract_strided_slice %288 {offsets = [0, 0], sizes = [8, 128], strides = [1, 1]} : vector<16x128xf32> to vector<8x128xf32>
    %290 = vector.extract_strided_slice %288 {offsets = [8, 0], sizes = [8, 128], strides = [1, 1]} : vector<16x128xf32> to vector<8x128xf32>
    %291 = arith.addf %289, %290 : vector<8x128xf32>
    %292 = arith.addf %221, %261 : vector<8x128xf32>
    %293 = arith.addf %222, %267 : vector<8x128xf32>
    %294 = arith.addf %223, %273 : vector<8x128xf32>
    %295 = arith.addf %224, %279 : vector<8x128xf32>
    %296 = arith.addf %225, %285 : vector<8x128xf32>
    %297 = arith.addf %226, %291 : vector<8x128xf32>
    %c0_121 = arith.constant 0 : index
    %c0_122 = arith.constant 0 : index
    %c4_123 = arith.constant 4 : index
    %c0_124 = arith.constant 0 : index
    %c0_125 = arith.constant 0 : index
    %298 = vector.load %arg2[%c0_121, %c0_122, %c4_123, %c0_124, %c0_125] : memref<1x1x10x16x128xf32, #tpu.memory_space<vmem>>, vector<1x1x1x16x128xf32>
    %299 = vector.shape_cast %298 : vector<1x1x1x16x128xf32> to vector<16x128xf32>
    %c0_126 = arith.constant 0 : index
    %c0_127 = arith.constant 0 : index
    %c5_128 = arith.constant 5 : index
    %c0_129 = arith.constant 0 : index
    %c0_130 = arith.constant 0 : index
    %300 = vector.load %arg2[%c0_126, %c0_127, %c5_128, %c0_129, %c0_130] : memref<1x1x10x16x128xf32, #tpu.memory_space<vmem>>, vector<1x1x1x16x128xf32>
    %301 = vector.shape_cast %300 : vector<1x1x1x16x128xf32> to vector<16x128xf32>
    %c0_131 = arith.constant 0 : index
    %c0_132 = arith.constant 0 : index
    %c6 = arith.constant 6 : index
    %c0_133 = arith.constant 0 : index
    %c0_134 = arith.constant 0 : index
    %302 = vector.load %arg2[%c0_131, %c0_132, %c6, %c0_133, %c0_134] : memref<1x1x10x16x128xf32, #tpu.memory_space<vmem>>, vector<1x1x1x16x128xf32>
    %303 = vector.shape_cast %302 : vector<1x1x1x16x128xf32> to vector<16x128xf32>
    %cst_135 = arith.constant 2.000000e+00 : f32
    %304 = vector.broadcast %cst_135 : f32 to vector<16x128xf32>
    %305 = arith.mulf %304, %301 : vector<16x128xf32>
    %c1_i32_136 = arith.constant 1 : i32
    %306 = tpu.dynamic_rotate %301 by %c1_i32_136 dim 0 : vector<16x128xf32>, i32 -> vector<16x128xf32>
    %c15_i32_137 = arith.constant 15 : i32
    %307 = tpu.dynamic_rotate %301 by %c15_i32_137 dim 0 : vector<16x128xf32>, i32 -> vector<16x128xf32>
    %c1_i32_138 = arith.constant 1 : i32
    %308 = tpu.dynamic_rotate %301 by %c1_i32_138 dim 1 : vector<16x128xf32>, i32 -> vector<16x128xf32>
    %c127_i32_139 = arith.constant 127 : i32
    %309 = tpu.dynamic_rotate %301 by %c127_i32_139 dim 1 : vector<16x128xf32>, i32 -> vector<16x128xf32>
    %310 = arith.subf %303, %299 : vector<16x128xf32>
    %311 = arith.subf %306, %307 : vector<16x128xf32>
    %312 = arith.addf %303, %299 : vector<16x128xf32>
    %313 = arith.subf %312, %305 : vector<16x128xf32>
    %314 = arith.addf %306, %307 : vector<16x128xf32>
    %315 = arith.subf %314, %305 : vector<16x128xf32>
    %316 = arith.addf %308, %309 : vector<16x128xf32>
    %317 = arith.subf %316, %305 : vector<16x128xf32>
    %c1_i32_140 = arith.constant 1 : i32
    %318 = tpu.dynamic_rotate %310 by %c1_i32_140 dim 0 : vector<16x128xf32>, i32 -> vector<16x128xf32>
    %c15_i32_141 = arith.constant 15 : i32
    %319 = tpu.dynamic_rotate %310 by %c15_i32_141 dim 0 : vector<16x128xf32>, i32 -> vector<16x128xf32>
    %320 = arith.subf %318, %319 : vector<16x128xf32>
    %c1_i32_142 = arith.constant 1 : i32
    %321 = tpu.dynamic_rotate %310 by %c1_i32_142 dim 1 : vector<16x128xf32>, i32 -> vector<16x128xf32>
    %c127_i32_143 = arith.constant 127 : i32
    %322 = tpu.dynamic_rotate %310 by %c127_i32_143 dim 1 : vector<16x128xf32>, i32 -> vector<16x128xf32>
    %323 = arith.subf %321, %322 : vector<16x128xf32>
    %c1_i32_144 = arith.constant 1 : i32
    %324 = tpu.dynamic_rotate %311 by %c1_i32_144 dim 1 : vector<16x128xf32>, i32 -> vector<16x128xf32>
    %c127_i32_145 = arith.constant 127 : i32
    %325 = tpu.dynamic_rotate %311 by %c127_i32_145 dim 1 : vector<16x128xf32>, i32 -> vector<16x128xf32>
    %326 = arith.subf %324, %325 : vector<16x128xf32>
    %327 = arith.mulf %313, %313 : vector<16x128xf32>
    %cst_146 = arith.constant 0.000000e+00 : f32
    %328 = vector.broadcast %cst_146 : f32 to vector<16x128xf32>
    %329 = arith.select %12, %327, %328 : vector<16x128xi1>, vector<16x128xf32>
    %330 = vector.extract_strided_slice %329 {offsets = [0, 0], sizes = [8, 128], strides = [1, 1]} : vector<16x128xf32> to vector<8x128xf32>
    %331 = vector.extract_strided_slice %329 {offsets = [8, 0], sizes = [8, 128], strides = [1, 1]} : vector<16x128xf32> to vector<8x128xf32>
    %332 = arith.addf %330, %331 : vector<8x128xf32>
    %333 = arith.mulf %315, %315 : vector<16x128xf32>
    %cst_147 = arith.constant 0.000000e+00 : f32
    %334 = vector.broadcast %cst_147 : f32 to vector<16x128xf32>
    %335 = arith.select %12, %333, %334 : vector<16x128xi1>, vector<16x128xf32>
    %336 = vector.extract_strided_slice %335 {offsets = [0, 0], sizes = [8, 128], strides = [1, 1]} : vector<16x128xf32> to vector<8x128xf32>
    %337 = vector.extract_strided_slice %335 {offsets = [8, 0], sizes = [8, 128], strides = [1, 1]} : vector<16x128xf32> to vector<8x128xf32>
    %338 = arith.addf %336, %337 : vector<8x128xf32>
    %339 = arith.mulf %317, %317 : vector<16x128xf32>
    %cst_148 = arith.constant 0.000000e+00 : f32
    %340 = vector.broadcast %cst_148 : f32 to vector<16x128xf32>
    %341 = arith.select %12, %339, %340 : vector<16x128xi1>, vector<16x128xf32>
    %342 = vector.extract_strided_slice %341 {offsets = [0, 0], sizes = [8, 128], strides = [1, 1]} : vector<16x128xf32> to vector<8x128xf32>
    %343 = vector.extract_strided_slice %341 {offsets = [8, 0], sizes = [8, 128], strides = [1, 1]} : vector<16x128xf32> to vector<8x128xf32>
    %344 = arith.addf %342, %343 : vector<8x128xf32>
    %345 = arith.mulf %320, %320 : vector<16x128xf32>
    %cst_149 = arith.constant 0.000000e+00 : f32
    %346 = vector.broadcast %cst_149 : f32 to vector<16x128xf32>
    %347 = arith.select %12, %345, %346 : vector<16x128xi1>, vector<16x128xf32>
    %348 = vector.extract_strided_slice %347 {offsets = [0, 0], sizes = [8, 128], strides = [1, 1]} : vector<16x128xf32> to vector<8x128xf32>
    %349 = vector.extract_strided_slice %347 {offsets = [8, 0], sizes = [8, 128], strides = [1, 1]} : vector<16x128xf32> to vector<8x128xf32>
    %350 = arith.addf %348, %349 : vector<8x128xf32>
    %351 = arith.mulf %326, %326 : vector<16x128xf32>
    %cst_150 = arith.constant 0.000000e+00 : f32
    %352 = vector.broadcast %cst_150 : f32 to vector<16x128xf32>
    %353 = arith.select %12, %351, %352 : vector<16x128xi1>, vector<16x128xf32>
    %354 = vector.extract_strided_slice %353 {offsets = [0, 0], sizes = [8, 128], strides = [1, 1]} : vector<16x128xf32> to vector<8x128xf32>
    %355 = vector.extract_strided_slice %353 {offsets = [8, 0], sizes = [8, 128], strides = [1, 1]} : vector<16x128xf32> to vector<8x128xf32>
    %356 = arith.addf %354, %355 : vector<8x128xf32>
    %357 = arith.mulf %323, %323 : vector<16x128xf32>
    %cst_151 = arith.constant 0.000000e+00 : f32
    %358 = vector.broadcast %cst_151 : f32 to vector<16x128xf32>
    %359 = arith.select %12, %357, %358 : vector<16x128xi1>, vector<16x128xf32>
    %360 = vector.extract_strided_slice %359 {offsets = [0, 0], sizes = [8, 128], strides = [1, 1]} : vector<16x128xf32> to vector<8x128xf32>
    %361 = vector.extract_strided_slice %359 {offsets = [8, 0], sizes = [8, 128], strides = [1, 1]} : vector<16x128xf32> to vector<8x128xf32>
    %362 = arith.addf %360, %361 : vector<8x128xf32>
    %363 = arith.addf %292, %332 : vector<8x128xf32>
    %364 = arith.addf %293, %338 : vector<8x128xf32>
    %365 = arith.addf %294, %344 : vector<8x128xf32>
    %366 = arith.addf %295, %350 : vector<8x128xf32>
    %367 = arith.addf %296, %356 : vector<8x128xf32>
    %368 = arith.addf %297, %362 : vector<8x128xf32>
    %c0_152 = arith.constant 0 : index
    %c0_153 = arith.constant 0 : index
    %c5_154 = arith.constant 5 : index
    %c0_155 = arith.constant 0 : index
    %c0_156 = arith.constant 0 : index
    %369 = vector.load %arg2[%c0_152, %c0_153, %c5_154, %c0_155, %c0_156] : memref<1x1x10x16x128xf32, #tpu.memory_space<vmem>>, vector<1x1x1x16x128xf32>
    %370 = vector.shape_cast %369 : vector<1x1x1x16x128xf32> to vector<16x128xf32>
    %c0_157 = arith.constant 0 : index
    %c0_158 = arith.constant 0 : index
    %c6_159 = arith.constant 6 : index
    %c0_160 = arith.constant 0 : index
    %c0_161 = arith.constant 0 : index
    %371 = vector.load %arg2[%c0_157, %c0_158, %c6_159, %c0_160, %c0_161] : memref<1x1x10x16x128xf32, #tpu.memory_space<vmem>>, vector<1x1x1x16x128xf32>
    %372 = vector.shape_cast %371 : vector<1x1x1x16x128xf32> to vector<16x128xf32>
    %c0_162 = arith.constant 0 : index
    %c0_163 = arith.constant 0 : index
    %c7 = arith.constant 7 : index
    %c0_164 = arith.constant 0 : index
    %c0_165 = arith.constant 0 : index
    %373 = vector.load %arg2[%c0_162, %c0_163, %c7, %c0_164, %c0_165] : memref<1x1x10x16x128xf32, #tpu.memory_space<vmem>>, vector<1x1x1x16x128xf32>
    %374 = vector.shape_cast %373 : vector<1x1x1x16x128xf32> to vector<16x128xf32>
    %cst_166 = arith.constant 2.000000e+00 : f32
    %375 = vector.broadcast %cst_166 : f32 to vector<16x128xf32>
    %376 = arith.mulf %375, %372 : vector<16x128xf32>
    %c1_i32_167 = arith.constant 1 : i32
    %377 = tpu.dynamic_rotate %372 by %c1_i32_167 dim 0 : vector<16x128xf32>, i32 -> vector<16x128xf32>
    %c15_i32_168 = arith.constant 15 : i32
    %378 = tpu.dynamic_rotate %372 by %c15_i32_168 dim 0 : vector<16x128xf32>, i32 -> vector<16x128xf32>
    %c1_i32_169 = arith.constant 1 : i32
    %379 = tpu.dynamic_rotate %372 by %c1_i32_169 dim 1 : vector<16x128xf32>, i32 -> vector<16x128xf32>
    %c127_i32_170 = arith.constant 127 : i32
    %380 = tpu.dynamic_rotate %372 by %c127_i32_170 dim 1 : vector<16x128xf32>, i32 -> vector<16x128xf32>
    %381 = arith.subf %374, %370 : vector<16x128xf32>
    %382 = arith.subf %377, %378 : vector<16x128xf32>
    %383 = arith.addf %374, %370 : vector<16x128xf32>
    %384 = arith.subf %383, %376 : vector<16x128xf32>
    %385 = arith.addf %377, %378 : vector<16x128xf32>
    %386 = arith.subf %385, %376 : vector<16x128xf32>
    %387 = arith.addf %379, %380 : vector<16x128xf32>
    %388 = arith.subf %387, %376 : vector<16x128xf32>
    %c1_i32_171 = arith.constant 1 : i32
    %389 = tpu.dynamic_rotate %381 by %c1_i32_171 dim 0 : vector<16x128xf32>, i32 -> vector<16x128xf32>
    %c15_i32_172 = arith.constant 15 : i32
    %390 = tpu.dynamic_rotate %381 by %c15_i32_172 dim 0 : vector<16x128xf32>, i32 -> vector<16x128xf32>
    %391 = arith.subf %389, %390 : vector<16x128xf32>
    %c1_i32_173 = arith.constant 1 : i32
    %392 = tpu.dynamic_rotate %381 by %c1_i32_173 dim 1 : vector<16x128xf32>, i32 -> vector<16x128xf32>
    %c127_i32_174 = arith.constant 127 : i32
    %393 = tpu.dynamic_rotate %381 by %c127_i32_174 dim 1 : vector<16x128xf32>, i32 -> vector<16x128xf32>
    %394 = arith.subf %392, %393 : vector<16x128xf32>
    %c1_i32_175 = arith.constant 1 : i32
    %395 = tpu.dynamic_rotate %382 by %c1_i32_175 dim 1 : vector<16x128xf32>, i32 -> vector<16x128xf32>
    %c127_i32_176 = arith.constant 127 : i32
    %396 = tpu.dynamic_rotate %382 by %c127_i32_176 dim 1 : vector<16x128xf32>, i32 -> vector<16x128xf32>
    %397 = arith.subf %395, %396 : vector<16x128xf32>
    %398 = arith.mulf %384, %384 : vector<16x128xf32>
    %cst_177 = arith.constant 0.000000e+00 : f32
    %399 = vector.broadcast %cst_177 : f32 to vector<16x128xf32>
    %400 = arith.select %12, %398, %399 : vector<16x128xi1>, vector<16x128xf32>
    %401 = vector.extract_strided_slice %400 {offsets = [0, 0], sizes = [8, 128], strides = [1, 1]} : vector<16x128xf32> to vector<8x128xf32>
    %402 = vector.extract_strided_slice %400 {offsets = [8, 0], sizes = [8, 128], strides = [1, 1]} : vector<16x128xf32> to vector<8x128xf32>
    %403 = arith.addf %401, %402 : vector<8x128xf32>
    %404 = arith.mulf %386, %386 : vector<16x128xf32>
    %cst_178 = arith.constant 0.000000e+00 : f32
    %405 = vector.broadcast %cst_178 : f32 to vector<16x128xf32>
    %406 = arith.select %12, %404, %405 : vector<16x128xi1>, vector<16x128xf32>
    %407 = vector.extract_strided_slice %406 {offsets = [0, 0], sizes = [8, 128], strides = [1, 1]} : vector<16x128xf32> to vector<8x128xf32>
    %408 = vector.extract_strided_slice %406 {offsets = [8, 0], sizes = [8, 128], strides = [1, 1]} : vector<16x128xf32> to vector<8x128xf32>
    %409 = arith.addf %407, %408 : vector<8x128xf32>
    %410 = arith.mulf %388, %388 : vector<16x128xf32>
    %cst_179 = arith.constant 0.000000e+00 : f32
    %411 = vector.broadcast %cst_179 : f32 to vector<16x128xf32>
    %412 = arith.select %12, %410, %411 : vector<16x128xi1>, vector<16x128xf32>
    %413 = vector.extract_strided_slice %412 {offsets = [0, 0], sizes = [8, 128], strides = [1, 1]} : vector<16x128xf32> to vector<8x128xf32>
    %414 = vector.extract_strided_slice %412 {offsets = [8, 0], sizes = [8, 128], strides = [1, 1]} : vector<16x128xf32> to vector<8x128xf32>
    %415 = arith.addf %413, %414 : vector<8x128xf32>
    %416 = arith.mulf %391, %391 : vector<16x128xf32>
    %cst_180 = arith.constant 0.000000e+00 : f32
    %417 = vector.broadcast %cst_180 : f32 to vector<16x128xf32>
    %418 = arith.select %12, %416, %417 : vector<16x128xi1>, vector<16x128xf32>
    %419 = vector.extract_strided_slice %418 {offsets = [0, 0], sizes = [8, 128], strides = [1, 1]} : vector<16x128xf32> to vector<8x128xf32>
    %420 = vector.extract_strided_slice %418 {offsets = [8, 0], sizes = [8, 128], strides = [1, 1]} : vector<16x128xf32> to vector<8x128xf32>
    %421 = arith.addf %419, %420 : vector<8x128xf32>
    %422 = arith.mulf %397, %397 : vector<16x128xf32>
    %cst_181 = arith.constant 0.000000e+00 : f32
    %423 = vector.broadcast %cst_181 : f32 to vector<16x128xf32>
    %424 = arith.select %12, %422, %423 : vector<16x128xi1>, vector<16x128xf32>
    %425 = vector.extract_strided_slice %424 {offsets = [0, 0], sizes = [8, 128], strides = [1, 1]} : vector<16x128xf32> to vector<8x128xf32>
    %426 = vector.extract_strided_slice %424 {offsets = [8, 0], sizes = [8, 128], strides = [1, 1]} : vector<16x128xf32> to vector<8x128xf32>
    %427 = arith.addf %425, %426 : vector<8x128xf32>
    %428 = arith.mulf %394, %394 : vector<16x128xf32>
    %cst_182 = arith.constant 0.000000e+00 : f32
    %429 = vector.broadcast %cst_182 : f32 to vector<16x128xf32>
    %430 = arith.select %12, %428, %429 : vector<16x128xi1>, vector<16x128xf32>
    %431 = vector.extract_strided_slice %430 {offsets = [0, 0], sizes = [8, 128], strides = [1, 1]} : vector<16x128xf32> to vector<8x128xf32>
    %432 = vector.extract_strided_slice %430 {offsets = [8, 0], sizes = [8, 128], strides = [1, 1]} : vector<16x128xf32> to vector<8x128xf32>
    %433 = arith.addf %431, %432 : vector<8x128xf32>
    %434 = arith.addf %363, %403 : vector<8x128xf32>
    %435 = arith.addf %364, %409 : vector<8x128xf32>
    %436 = arith.addf %365, %415 : vector<8x128xf32>
    %437 = arith.addf %366, %421 : vector<8x128xf32>
    %438 = arith.addf %367, %427 : vector<8x128xf32>
    %439 = arith.addf %368, %433 : vector<8x128xf32>
    %c0_183 = arith.constant 0 : index
    %c0_184 = arith.constant 0 : index
    %c6_185 = arith.constant 6 : index
    %c0_186 = arith.constant 0 : index
    %c0_187 = arith.constant 0 : index
    %440 = vector.load %arg2[%c0_183, %c0_184, %c6_185, %c0_186, %c0_187] : memref<1x1x10x16x128xf32, #tpu.memory_space<vmem>>, vector<1x1x1x16x128xf32>
    %441 = vector.shape_cast %440 : vector<1x1x1x16x128xf32> to vector<16x128xf32>
    %c0_188 = arith.constant 0 : index
    %c0_189 = arith.constant 0 : index
    %c7_190 = arith.constant 7 : index
    %c0_191 = arith.constant 0 : index
    %c0_192 = arith.constant 0 : index
    %442 = vector.load %arg2[%c0_188, %c0_189, %c7_190, %c0_191, %c0_192] : memref<1x1x10x16x128xf32, #tpu.memory_space<vmem>>, vector<1x1x1x16x128xf32>
    %443 = vector.shape_cast %442 : vector<1x1x1x16x128xf32> to vector<16x128xf32>
    %c0_193 = arith.constant 0 : index
    %c0_194 = arith.constant 0 : index
    %c8 = arith.constant 8 : index
    %c0_195 = arith.constant 0 : index
    %c0_196 = arith.constant 0 : index
    %444 = vector.load %arg2[%c0_193, %c0_194, %c8, %c0_195, %c0_196] : memref<1x1x10x16x128xf32, #tpu.memory_space<vmem>>, vector<1x1x1x16x128xf32>
    %445 = vector.shape_cast %444 : vector<1x1x1x16x128xf32> to vector<16x128xf32>
    %cst_197 = arith.constant 2.000000e+00 : f32
    %446 = vector.broadcast %cst_197 : f32 to vector<16x128xf32>
    %447 = arith.mulf %446, %443 : vector<16x128xf32>
    %c1_i32_198 = arith.constant 1 : i32
    %448 = tpu.dynamic_rotate %443 by %c1_i32_198 dim 0 : vector<16x128xf32>, i32 -> vector<16x128xf32>
    %c15_i32_199 = arith.constant 15 : i32
    %449 = tpu.dynamic_rotate %443 by %c15_i32_199 dim 0 : vector<16x128xf32>, i32 -> vector<16x128xf32>
    %c1_i32_200 = arith.constant 1 : i32
    %450 = tpu.dynamic_rotate %443 by %c1_i32_200 dim 1 : vector<16x128xf32>, i32 -> vector<16x128xf32>
    %c127_i32_201 = arith.constant 127 : i32
    %451 = tpu.dynamic_rotate %443 by %c127_i32_201 dim 1 : vector<16x128xf32>, i32 -> vector<16x128xf32>
    %452 = arith.subf %445, %441 : vector<16x128xf32>
    %453 = arith.subf %448, %449 : vector<16x128xf32>
    %454 = arith.addf %445, %441 : vector<16x128xf32>
    %455 = arith.subf %454, %447 : vector<16x128xf32>
    %456 = arith.addf %448, %449 : vector<16x128xf32>
    %457 = arith.subf %456, %447 : vector<16x128xf32>
    %458 = arith.addf %450, %451 : vector<16x128xf32>
    %459 = arith.subf %458, %447 : vector<16x128xf32>
    %c1_i32_202 = arith.constant 1 : i32
    %460 = tpu.dynamic_rotate %452 by %c1_i32_202 dim 0 : vector<16x128xf32>, i32 -> vector<16x128xf32>
    %c15_i32_203 = arith.constant 15 : i32
    %461 = tpu.dynamic_rotate %452 by %c15_i32_203 dim 0 : vector<16x128xf32>, i32 -> vector<16x128xf32>
    %462 = arith.subf %460, %461 : vector<16x128xf32>
    %c1_i32_204 = arith.constant 1 : i32
    %463 = tpu.dynamic_rotate %452 by %c1_i32_204 dim 1 : vector<16x128xf32>, i32 -> vector<16x128xf32>
    %c127_i32_205 = arith.constant 127 : i32
    %464 = tpu.dynamic_rotate %452 by %c127_i32_205 dim 1 : vector<16x128xf32>, i32 -> vector<16x128xf32>
    %465 = arith.subf %463, %464 : vector<16x128xf32>
    %c1_i32_206 = arith.constant 1 : i32
    %466 = tpu.dynamic_rotate %453 by %c1_i32_206 dim 1 : vector<16x128xf32>, i32 -> vector<16x128xf32>
    %c127_i32_207 = arith.constant 127 : i32
    %467 = tpu.dynamic_rotate %453 by %c127_i32_207 dim 1 : vector<16x128xf32>, i32 -> vector<16x128xf32>
    %468 = arith.subf %466, %467 : vector<16x128xf32>
    %469 = arith.mulf %455, %455 : vector<16x128xf32>
    %cst_208 = arith.constant 0.000000e+00 : f32
    %470 = vector.broadcast %cst_208 : f32 to vector<16x128xf32>
    %471 = arith.select %12, %469, %470 : vector<16x128xi1>, vector<16x128xf32>
    %472 = vector.extract_strided_slice %471 {offsets = [0, 0], sizes = [8, 128], strides = [1, 1]} : vector<16x128xf32> to vector<8x128xf32>
    %473 = vector.extract_strided_slice %471 {offsets = [8, 0], sizes = [8, 128], strides = [1, 1]} : vector<16x128xf32> to vector<8x128xf32>
    %474 = arith.addf %472, %473 : vector<8x128xf32>
    %475 = arith.mulf %457, %457 : vector<16x128xf32>
    %cst_209 = arith.constant 0.000000e+00 : f32
    %476 = vector.broadcast %cst_209 : f32 to vector<16x128xf32>
    %477 = arith.select %12, %475, %476 : vector<16x128xi1>, vector<16x128xf32>
    %478 = vector.extract_strided_slice %477 {offsets = [0, 0], sizes = [8, 128], strides = [1, 1]} : vector<16x128xf32> to vector<8x128xf32>
    %479 = vector.extract_strided_slice %477 {offsets = [8, 0], sizes = [8, 128], strides = [1, 1]} : vector<16x128xf32> to vector<8x128xf32>
    %480 = arith.addf %478, %479 : vector<8x128xf32>
    %481 = arith.mulf %459, %459 : vector<16x128xf32>
    %cst_210 = arith.constant 0.000000e+00 : f32
    %482 = vector.broadcast %cst_210 : f32 to vector<16x128xf32>
    %483 = arith.select %12, %481, %482 : vector<16x128xi1>, vector<16x128xf32>
    %484 = vector.extract_strided_slice %483 {offsets = [0, 0], sizes = [8, 128], strides = [1, 1]} : vector<16x128xf32> to vector<8x128xf32>
    %485 = vector.extract_strided_slice %483 {offsets = [8, 0], sizes = [8, 128], strides = [1, 1]} : vector<16x128xf32> to vector<8x128xf32>
    %486 = arith.addf %484, %485 : vector<8x128xf32>
    %487 = arith.mulf %462, %462 : vector<16x128xf32>
    %cst_211 = arith.constant 0.000000e+00 : f32
    %488 = vector.broadcast %cst_211 : f32 to vector<16x128xf32>
    %489 = arith.select %12, %487, %488 : vector<16x128xi1>, vector<16x128xf32>
    %490 = vector.extract_strided_slice %489 {offsets = [0, 0], sizes = [8, 128], strides = [1, 1]} : vector<16x128xf32> to vector<8x128xf32>
    %491 = vector.extract_strided_slice %489 {offsets = [8, 0], sizes = [8, 128], strides = [1, 1]} : vector<16x128xf32> to vector<8x128xf32>
    %492 = arith.addf %490, %491 : vector<8x128xf32>
    %493 = arith.mulf %468, %468 : vector<16x128xf32>
    %cst_212 = arith.constant 0.000000e+00 : f32
    %494 = vector.broadcast %cst_212 : f32 to vector<16x128xf32>
    %495 = arith.select %12, %493, %494 : vector<16x128xi1>, vector<16x128xf32>
    %496 = vector.extract_strided_slice %495 {offsets = [0, 0], sizes = [8, 128], strides = [1, 1]} : vector<16x128xf32> to vector<8x128xf32>
    %497 = vector.extract_strided_slice %495 {offsets = [8, 0], sizes = [8, 128], strides = [1, 1]} : vector<16x128xf32> to vector<8x128xf32>
    %498 = arith.addf %496, %497 : vector<8x128xf32>
    %499 = arith.mulf %465, %465 : vector<16x128xf32>
    %cst_213 = arith.constant 0.000000e+00 : f32
    %500 = vector.broadcast %cst_213 : f32 to vector<16x128xf32>
    %501 = arith.select %12, %499, %500 : vector<16x128xi1>, vector<16x128xf32>
    %502 = vector.extract_strided_slice %501 {offsets = [0, 0], sizes = [8, 128], strides = [1, 1]} : vector<16x128xf32> to vector<8x128xf32>
    %503 = vector.extract_strided_slice %501 {offsets = [8, 0], sizes = [8, 128], strides = [1, 1]} : vector<16x128xf32> to vector<8x128xf32>
    %504 = arith.addf %502, %503 : vector<8x128xf32>
    %505 = arith.addf %434, %474 : vector<8x128xf32>
    %506 = arith.addf %435, %480 : vector<8x128xf32>
    %507 = arith.addf %436, %486 : vector<8x128xf32>
    %508 = arith.addf %437, %492 : vector<8x128xf32>
    %509 = arith.addf %438, %498 : vector<8x128xf32>
    %510 = arith.addf %439, %504 : vector<8x128xf32>
    %c0_214 = arith.constant 0 : index
    %c0_215 = arith.constant 0 : index
    %c7_216 = arith.constant 7 : index
    %c0_217 = arith.constant 0 : index
    %c0_218 = arith.constant 0 : index
    %511 = vector.load %arg2[%c0_214, %c0_215, %c7_216, %c0_217, %c0_218] : memref<1x1x10x16x128xf32, #tpu.memory_space<vmem>>, vector<1x1x1x16x128xf32>
    %512 = vector.shape_cast %511 : vector<1x1x1x16x128xf32> to vector<16x128xf32>
    %c0_219 = arith.constant 0 : index
    %c0_220 = arith.constant 0 : index
    %c8_221 = arith.constant 8 : index
    %c0_222 = arith.constant 0 : index
    %c0_223 = arith.constant 0 : index
    %513 = vector.load %arg2[%c0_219, %c0_220, %c8_221, %c0_222, %c0_223] : memref<1x1x10x16x128xf32, #tpu.memory_space<vmem>>, vector<1x1x1x16x128xf32>
    %514 = vector.shape_cast %513 : vector<1x1x1x16x128xf32> to vector<16x128xf32>
    %c0_224 = arith.constant 0 : index
    %c0_225 = arith.constant 0 : index
    %c9 = arith.constant 9 : index
    %c0_226 = arith.constant 0 : index
    %c0_227 = arith.constant 0 : index
    %515 = vector.load %arg2[%c0_224, %c0_225, %c9, %c0_226, %c0_227] : memref<1x1x10x16x128xf32, #tpu.memory_space<vmem>>, vector<1x1x1x16x128xf32>
    %516 = vector.shape_cast %515 : vector<1x1x1x16x128xf32> to vector<16x128xf32>
    %cst_228 = arith.constant 2.000000e+00 : f32
    %517 = vector.broadcast %cst_228 : f32 to vector<16x128xf32>
    %518 = arith.mulf %517, %514 : vector<16x128xf32>
    %c1_i32_229 = arith.constant 1 : i32
    %519 = tpu.dynamic_rotate %514 by %c1_i32_229 dim 0 : vector<16x128xf32>, i32 -> vector<16x128xf32>
    %c15_i32_230 = arith.constant 15 : i32
    %520 = tpu.dynamic_rotate %514 by %c15_i32_230 dim 0 : vector<16x128xf32>, i32 -> vector<16x128xf32>
    %c1_i32_231 = arith.constant 1 : i32
    %521 = tpu.dynamic_rotate %514 by %c1_i32_231 dim 1 : vector<16x128xf32>, i32 -> vector<16x128xf32>
    %c127_i32_232 = arith.constant 127 : i32
    %522 = tpu.dynamic_rotate %514 by %c127_i32_232 dim 1 : vector<16x128xf32>, i32 -> vector<16x128xf32>
    %523 = arith.subf %516, %512 : vector<16x128xf32>
    %524 = arith.subf %519, %520 : vector<16x128xf32>
    %525 = arith.addf %516, %512 : vector<16x128xf32>
    %526 = arith.subf %525, %518 : vector<16x128xf32>
    %527 = arith.addf %519, %520 : vector<16x128xf32>
    %528 = arith.subf %527, %518 : vector<16x128xf32>
    %529 = arith.addf %521, %522 : vector<16x128xf32>
    %530 = arith.subf %529, %518 : vector<16x128xf32>
    %c1_i32_233 = arith.constant 1 : i32
    %531 = tpu.dynamic_rotate %523 by %c1_i32_233 dim 0 : vector<16x128xf32>, i32 -> vector<16x128xf32>
    %c15_i32_234 = arith.constant 15 : i32
    %532 = tpu.dynamic_rotate %523 by %c15_i32_234 dim 0 : vector<16x128xf32>, i32 -> vector<16x128xf32>
    %533 = arith.subf %531, %532 : vector<16x128xf32>
    %c1_i32_235 = arith.constant 1 : i32
    %534 = tpu.dynamic_rotate %523 by %c1_i32_235 dim 1 : vector<16x128xf32>, i32 -> vector<16x128xf32>
    %c127_i32_236 = arith.constant 127 : i32
    %535 = tpu.dynamic_rotate %523 by %c127_i32_236 dim 1 : vector<16x128xf32>, i32 -> vector<16x128xf32>
    %536 = arith.subf %534, %535 : vector<16x128xf32>
    %c1_i32_237 = arith.constant 1 : i32
    %537 = tpu.dynamic_rotate %524 by %c1_i32_237 dim 1 : vector<16x128xf32>, i32 -> vector<16x128xf32>
    %c127_i32_238 = arith.constant 127 : i32
    %538 = tpu.dynamic_rotate %524 by %c127_i32_238 dim 1 : vector<16x128xf32>, i32 -> vector<16x128xf32>
    %539 = arith.subf %537, %538 : vector<16x128xf32>
    %540 = arith.mulf %526, %526 : vector<16x128xf32>
    %cst_239 = arith.constant 0.000000e+00 : f32
    %541 = vector.broadcast %cst_239 : f32 to vector<16x128xf32>
    %542 = arith.select %12, %540, %541 : vector<16x128xi1>, vector<16x128xf32>
    %543 = vector.extract_strided_slice %542 {offsets = [0, 0], sizes = [8, 128], strides = [1, 1]} : vector<16x128xf32> to vector<8x128xf32>
    %544 = vector.extract_strided_slice %542 {offsets = [8, 0], sizes = [8, 128], strides = [1, 1]} : vector<16x128xf32> to vector<8x128xf32>
    %545 = arith.addf %543, %544 : vector<8x128xf32>
    %546 = arith.mulf %528, %528 : vector<16x128xf32>
    %cst_240 = arith.constant 0.000000e+00 : f32
    %547 = vector.broadcast %cst_240 : f32 to vector<16x128xf32>
    %548 = arith.select %12, %546, %547 : vector<16x128xi1>, vector<16x128xf32>
    %549 = vector.extract_strided_slice %548 {offsets = [0, 0], sizes = [8, 128], strides = [1, 1]} : vector<16x128xf32> to vector<8x128xf32>
    %550 = vector.extract_strided_slice %548 {offsets = [8, 0], sizes = [8, 128], strides = [1, 1]} : vector<16x128xf32> to vector<8x128xf32>
    %551 = arith.addf %549, %550 : vector<8x128xf32>
    %552 = arith.mulf %530, %530 : vector<16x128xf32>
    %cst_241 = arith.constant 0.000000e+00 : f32
    %553 = vector.broadcast %cst_241 : f32 to vector<16x128xf32>
    %554 = arith.select %12, %552, %553 : vector<16x128xi1>, vector<16x128xf32>
    %555 = vector.extract_strided_slice %554 {offsets = [0, 0], sizes = [8, 128], strides = [1, 1]} : vector<16x128xf32> to vector<8x128xf32>
    %556 = vector.extract_strided_slice %554 {offsets = [8, 0], sizes = [8, 128], strides = [1, 1]} : vector<16x128xf32> to vector<8x128xf32>
    %557 = arith.addf %555, %556 : vector<8x128xf32>
    %558 = arith.mulf %533, %533 : vector<16x128xf32>
    %cst_242 = arith.constant 0.000000e+00 : f32
    %559 = vector.broadcast %cst_242 : f32 to vector<16x128xf32>
    %560 = arith.select %12, %558, %559 : vector<16x128xi1>, vector<16x128xf32>
    %561 = vector.extract_strided_slice %560 {offsets = [0, 0], sizes = [8, 128], strides = [1, 1]} : vector<16x128xf32> to vector<8x128xf32>
    %562 = vector.extract_strided_slice %560 {offsets = [8, 0], sizes = [8, 128], strides = [1, 1]} : vector<16x128xf32> to vector<8x128xf32>
    %563 = arith.addf %561, %562 : vector<8x128xf32>
    %564 = arith.mulf %539, %539 : vector<16x128xf32>
    %cst_243 = arith.constant 0.000000e+00 : f32
    %565 = vector.broadcast %cst_243 : f32 to vector<16x128xf32>
    %566 = arith.select %12, %564, %565 : vector<16x128xi1>, vector<16x128xf32>
    %567 = vector.extract_strided_slice %566 {offsets = [0, 0], sizes = [8, 128], strides = [1, 1]} : vector<16x128xf32> to vector<8x128xf32>
    %568 = vector.extract_strided_slice %566 {offsets = [8, 0], sizes = [8, 128], strides = [1, 1]} : vector<16x128xf32> to vector<8x128xf32>
    %569 = arith.addf %567, %568 : vector<8x128xf32>
    %570 = arith.mulf %536, %536 : vector<16x128xf32>
    %cst_244 = arith.constant 0.000000e+00 : f32
    %571 = vector.broadcast %cst_244 : f32 to vector<16x128xf32>
    %572 = arith.select %12, %570, %571 : vector<16x128xi1>, vector<16x128xf32>
    %573 = vector.extract_strided_slice %572 {offsets = [0, 0], sizes = [8, 128], strides = [1, 1]} : vector<16x128xf32> to vector<8x128xf32>
    %574 = vector.extract_strided_slice %572 {offsets = [8, 0], sizes = [8, 128], strides = [1, 1]} : vector<16x128xf32> to vector<8x128xf32>
    %575 = arith.addf %573, %574 : vector<8x128xf32>
    %576 = arith.addf %505, %545 : vector<8x128xf32>
    %577 = arith.addf %506, %551 : vector<8x128xf32>
    %578 = arith.addf %507, %557 : vector<8x128xf32>
    %579 = arith.addf %508, %563 : vector<8x128xf32>
    %580 = arith.addf %509, %569 : vector<8x128xf32>
    %581 = arith.addf %510, %575 : vector<8x128xf32>
    %c0_245 = arith.constant 0 : index
    %c0_246 = arith.constant 0 : index
    %c0_247 = arith.constant 0 : index
    %c0_248 = arith.constant 0 : index
    %c0_249 = arith.constant 0 : index
    %582 = vector.load %arg3[%c0_245, %c0_246, %c0_247, %c0_248, %c0_249] : memref<1x1x1x48x128xf32, #tpu.memory_space<vmem>>, vector<1x1x1x8x128xf32>
    %583 = vector.shape_cast %582 : vector<1x1x1x8x128xf32> to vector<8x128xf32>
    %584 = vector.shape_cast %576 : vector<8x128xf32> to vector<1x1x1x8x128xf32>
    tpu.vector_store %arg3[%c0_245, %c0_246, %c0_247, %c0_248, %c0_249], %584 {strides = array<i32>} : memref<1x1x1x48x128xf32, #tpu.memory_space<vmem>>, vector<1x1x1x8x128xf32>,
    %c0_250 = arith.constant 0 : index
    %c0_251 = arith.constant 0 : index
    %c0_252 = arith.constant 0 : index
    %c8_253 = arith.constant 8 : index
    %c0_254 = arith.constant 0 : index
    %585 = vector.load %arg3[%c0_250, %c0_251, %c0_252, %c8_253, %c0_254] : memref<1x1x1x48x128xf32, #tpu.memory_space<vmem>>, vector<1x1x1x8x128xf32>
    %586 = vector.shape_cast %585 : vector<1x1x1x8x128xf32> to vector<8x128xf32>
    %587 = vector.shape_cast %577 : vector<8x128xf32> to vector<1x1x1x8x128xf32>
    tpu.vector_store %arg3[%c0_250, %c0_251, %c0_252, %c8_253, %c0_254], %587 {strides = array<i32>} : memref<1x1x1x48x128xf32, #tpu.memory_space<vmem>>, vector<1x1x1x8x128xf32>,
    %c0_255 = arith.constant 0 : index
    %c0_256 = arith.constant 0 : index
    %c0_257 = arith.constant 0 : index
    %c16 = arith.constant 16 : index
    %c0_258 = arith.constant 0 : index
    %588 = vector.load %arg3[%c0_255, %c0_256, %c0_257, %c16, %c0_258] : memref<1x1x1x48x128xf32, #tpu.memory_space<vmem>>, vector<1x1x1x8x128xf32>
    %589 = vector.shape_cast %588 : vector<1x1x1x8x128xf32> to vector<8x128xf32>
    %590 = vector.shape_cast %578 : vector<8x128xf32> to vector<1x1x1x8x128xf32>
    tpu.vector_store %arg3[%c0_255, %c0_256, %c0_257, %c16, %c0_258], %590 {strides = array<i32>} : memref<1x1x1x48x128xf32, #tpu.memory_space<vmem>>, vector<1x1x1x8x128xf32>,
    %c0_259 = arith.constant 0 : index
    %c0_260 = arith.constant 0 : index
    %c0_261 = arith.constant 0 : index
    %c24 = arith.constant 24 : index
    %c0_262 = arith.constant 0 : index
    %591 = vector.load %arg3[%c0_259, %c0_260, %c0_261, %c24, %c0_262] : memref<1x1x1x48x128xf32, #tpu.memory_space<vmem>>, vector<1x1x1x8x128xf32>
    %592 = vector.shape_cast %591 : vector<1x1x1x8x128xf32> to vector<8x128xf32>
    %593 = vector.shape_cast %579 : vector<8x128xf32> to vector<1x1x1x8x128xf32>
    tpu.vector_store %arg3[%c0_259, %c0_260, %c0_261, %c24, %c0_262], %593 {strides = array<i32>} : memref<1x1x1x48x128xf32, #tpu.memory_space<vmem>>, vector<1x1x1x8x128xf32>,
    %c0_263 = arith.constant 0 : index
    %c0_264 = arith.constant 0 : index
    %c0_265 = arith.constant 0 : index
    %c32 = arith.constant 32 : index
    %c0_266 = arith.constant 0 : index
    %594 = vector.load %arg3[%c0_263, %c0_264, %c0_265, %c32, %c0_266] : memref<1x1x1x48x128xf32, #tpu.memory_space<vmem>>, vector<1x1x1x8x128xf32>
    %595 = vector.shape_cast %594 : vector<1x1x1x8x128xf32> to vector<8x128xf32>
    %596 = vector.shape_cast %580 : vector<8x128xf32> to vector<1x1x1x8x128xf32>
    tpu.vector_store %arg3[%c0_263, %c0_264, %c0_265, %c32, %c0_266], %596 {strides = array<i32>} : memref<1x1x1x48x128xf32, #tpu.memory_space<vmem>>, vector<1x1x1x8x128xf32>,
    %c0_267 = arith.constant 0 : index
    %c0_268 = arith.constant 0 : index
    %c0_269 = arith.constant 0 : index
    %c40 = arith.constant 40 : index
    %c0_270 = arith.constant 0 : index
    %597 = vector.load %arg3[%c0_267, %c0_268, %c0_269, %c40, %c0_270] : memref<1x1x1x48x128xf32, #tpu.memory_space<vmem>>, vector<1x1x1x8x128xf32>
    %598 = vector.shape_cast %597 : vector<1x1x1x8x128xf32> to vector<8x128xf32>
    %599 = vector.shape_cast %581 : vector<8x128xf32> to vector<1x1x1x8x128xf32>
    tpu.vector_store %arg3[%c0_267, %c0_268, %c0_269, %c40, %c0_270], %599 {strides = array<i32>} : memref<1x1x1x48x128xf32, #tpu.memory_space<vmem>>, vector<1x1x1x8x128xf32>,
    return
  }
  func.func @transform_0(%arg0: i32, %arg1: i32) -> (i32, i32, i32, i32, i32) {
    %c0_i32 = arith.constant 0 : i32
    %c0_i32_0 = arith.constant 0 : i32
    %c0_i32_1 = arith.constant 0 : i32
    %c0_i32_2 = arith.constant 0 : i32
    return %arg0, %arg1, %c0_i32, %c0_i32_0, %c0_i32_1 : i32, i32, i32, i32, i32
  }
  func.func @transform_1(%arg0: i32, %arg1: i32) -> (i32, i32, i32, i32, i32) {
    %c0_i32 = arith.constant 0 : i32
    %c0_i32_0 = arith.constant 0 : i32
    %c0_i32_1 = arith.constant 0 : i32
    %c0_i32_2 = arith.constant 0 : i32
    return %arg0, %arg1, %c0_i32, %c0_i32_0, %c0_i32_1 : i32, i32, i32, i32, i32
  }
}

</mosaic_0001>

<bundles_post_ra>
// kernel: tpu_custom_call.1
= control target key start
LH: loop header
LB: loop body
LE: loop exit
PB: predicated region body
PF: predicated region fallthrough
CT: control target
= control target key end

     0   :  { %6 = vsyncpa [#allocation3], 0  ;;  %s2507_s0 = inlined_call_operand.hbm [shape: f32[2,3,10,16,128], index: 0, kind: input, shape index: {}]   ;;  %s2508_s1 = inlined_call_operand.hbm [shape: f32[2,3,1,48,128], index: 1, kind: output, shape index: {}]  }
   0x1   :  { %8 = vsyncpa [#allocation3 + $0x1], 0 }
   0x2   :  { %9 = vsyncpa [#allocation4], 0 }
   0x3   :  { %11 = vsyncpa [#allocation4 + $0x1], 0  ;;  %s1391_s6 = smov 0   ;;  %s1393_s7 = smov 0  }
   0x4   :  { %s1395_s8 = smov 0   ;;  %s1397_s9 = smov 0  }
   0x5   :  { %s1399_s10 = smov 0   ;;  %s1401_s11 = smov 0  }
   0x6   :  { %s1403_s12 = smov 0   ;;  %s1405_s13 = smov 0  }
   0x7 LB: > { %s1117_s14 = sadd.s32 4294967295, %s1373_s13   ;;  %s1118_s15 = sadd.s32 4294967294, %s1373_s13   ;;  %s1373_s13 = sphi %s1405_s13, %s17_s13   ;;  %s1369_s12 = sphi %s1403_s12, %s2527_s12   ;;  %s1365_s11 = sphi %s1401_s11, %s2526_s11   ;;  %s1361_s10 = sphi %s1399_s10, %s2525_s10   ;;  %s1357_s9 = sphi %s1397_s9, %s2524_s9   ;;  %s1353_s8 = sphi %s1395_s8, %s2523_s8   ;;  %s1349_s7 = sphi %s1393_s7, %s2522_s7   ;;  %s1345_s6 = sphi %s1391_s6, %s2521_s6  }
   0x8   : > { %s26_s16 = sadd.s32 1, %s1365_s11  ;;  %s29_s17 = sadd.s32 1, %s1369_s12 }
   0x9   : > { %p27_p0 = scmp.ge.s32.totalorder %s26_s16, 3  ;;  %s38_s18 = sadd.s32 1, %s1353_s8 }
   0xa   : > { %p45_p1 = scmp.ne.s32.totalorder %s1353_s8, %s1349_s7  ;;  %p46_p2 = scmp.eq.s32.totalorder %s1373_s13, 0 }
   0xb   : > { %s2529_s16 = smov (%p27_p0, %s26_s16), 0  ;;  %s2531_s17 = smov (!%p27_p0, %s29_s17), %s1369_s12 }
   0xc   : > { %s34_s19 = ssub.s32 %s1365_s11, %s2529_s16  ;;  %p1444_p3 = por %p46_p2, %p45_p1 }
   0xd   : > { %p31_p4 = scmp.ge.s32.totalorder %s2531_s17, 2  ;;  %p51_p5 = scmp.ne.s32.totalorder %s1349_s7, %s1345_s6 }
   0xe   : > { %p52_p6 = scmp.eq.s32.totalorder %s1117_s14, 0  ;;  %p77_p7 = scmp.eq.s32.totalorder %s1117_s14, 5 }
   0xf   : > { %s2533_s17 = smov (%p31_p4, %s2531_s17), 0  ;;  %p83_p10 = scmp.eq.s32.totalorder %s1118_s15, 5 }
  0x10   : > { %2511 = sst [smem:[#allocation8_spill]] %s2533_s17  ;;  %p1452_p8 = por %p52_p6, %p51_p5 }
  0x11   : > { %p1456_p9 = por %p77_p7, %p45_p1  ;;  %s33_s23 = ssub.s32 %s1369_s12, %s2533_s17 }
  0x12   : > { %s35_s24 = sor.u32 %s34_s19, %s33_s23  ;;  %p1462_p12 = por %p83_p10, %p51_p5 }
  0x13   : > { %p36_p11 = scmp.eq.s32.totalorder %s35_s24, 0  ;;  %p1163_p13 = scmp.lt.s32.totalorder %s1373_s13, 6 }
  0x14   : > { %s103_s26 = sand.u32 1, %s1353_s8   ;;  %s1145_s29 = smul.u32 20, %s1365_s11 }
  0x15   : > { %s1469_s27 = scalar_select %p36_p11, %s1353_s8, %s38_s18  }
  0x16   : > { %s1144_s28 = smul.u32 160, %s103_s26  ;;  %p1474_p0 = pnand %p1163_p13, %p1444_p3 }
  0x17   : > { %s1146_s2 = smul.u32 60, %s1369_s12  ;;  %p1122_p1 = scmp.ge.s32.totalorder %s1373_s13, 1 }
  0x18   : > { %s107_s3 = scalar_lea.vmem [#allocation2], %s1144_s28  ;;  %p125_p2 = scmp.lt.s32.totalorder %s1373_s13, 7 }
  0x19   : > { %s117_s4 = sshll.u32 %s107_s3, 4  ;;  %s112_s5 = sadd.s32 %s1146_s2, %s1145_s29  ;;  %s118_s4 = int_to_ptr.vmem [resolvable:$true] %s117_s4 }
  0x1a   : > { %s1121_s14 = sshll.u32 %s112_s5, 3  ;;  %s104_s20 = scalar_lea.sflag [#allocation3], %s103_s26 }
  0x1b   : > { %s114_s23 = scalar_lea.hbm %s2507_s0, %s1121_s14  ;;  %s1375_s24 = smov 128  }
  0x1c   : > { %s115_s18 = sshll.u32 %s114_s23, 4  ;;  %s1376_s17 = smov 8   ;;  %s116_s18 = int_to_ptr.hbm [resolvable:$true] %s115_s18 }
  0x1d   : > { %1158 = dma.hbm_to_vmem [thread:$0]  (!%p1474_p0), %s116_s18, 2560, %s118_s4, %s104_s20, %s1375_s24, %s1375_s24, %s1376_s17  }
  0x1e   : > { %p126_p3 = pnand %p1122_p1, %p125_p2 }
  0x1f   : > { %s1487_s28 = sand.u32 (!%p126_p3), 1, %s1349_s7  }
  0x20   : > { %129 = sbr.rel (%p126_p3) target bundleno = 415 (0x19f), region = 24  ;;  %s132_s2 = scalar_lea.sflag (!%p126_p3), [#allocation3], %s1487_s28 }
  0x21   : > { %s1147_s29 = smul.u32 (!%p126_p3), 160, %s1487_s28 }
  0x23   : > { %s1491_s3 = scalar_lea.vmem (!%p126_p3), [#allocation2], %s1147_s29 }
  0x25   : > { %1336 = dma.done.wait (%p1452_p8), %s132_s2, 2560  }
  0x26   : > { %1338 = vsyncadd (%p1452_p8), %s132_s2, 4294964736  ;;  %v155_v0 = vlaneseq  ;;  %v1508_v5 = vld [vmem:[%s1491_s3 + $0x10] sm:$0xff]  ;;  %v1511_v6 = vld [vmem:[%s1491_s3 + $0x18] sm:$0xff]  ;;  %s1377_s17 = smov 127   ;;  %s1378_s21 = smov 1  }
  0x27   : > { %v1514_v7 = vld [vmem:[%s1491_s3 + $0x8] sm:$0xff]  ;;  %196 = vrot.lane.b32.xlu1 %v1508_v5, %s1377_s17  ;;  %192 = vrot.lane.b32.xlu0 %v1508_v5, %s1378_s21  ;;  %v1527_v9 = vld [vmem:[%s1491_s3] sm:$0xff]  ;;  %v182_v10 = vrot.slane %v1508_v5, 7  ;;  %v183_v11 = vrot.slane %v1511_v6, 7  ;;  %v187_v12 = vrot.slane %v1508_v5, 1  ;;  %v188_v13 = vrot.slane %v1511_v6, 1 }
  0x28   : > { %v1497_v1 = vshrl.u32 %v155_v0, 7  ;;  %v159_v2 = vand.u32 127, %v155_v0  ;;  %v1523_v8 = vld [vmem:[%s1491_s3 + $0x28] sm:$0xff]  ;;  %v1541_v16 = vld [vmem:[%s1491_s3 + $0x20] sm:$0xff]  ;;  %v1550_v20 = vld [vmem:[%s1491_s3 + $0x30] sm:$0xff]  ;;  %s1148_s26 = smul.u32 48, %s1487_s28 }
  0x29   : > { %v201_v14 = vsub.f32 %v1523_v8, %v1514_v7  ;;  %v200_v17 = vsub.f32 %v1541_v16, %v1527_v9  ;;  %v1563_v29 = vsub.f32 %v1550_v20, %v1508_v5  ;;  %v1579_v37 = vld [vmem:[%s1491_s3 + $0x38] sm:$0xff]  ;;  %v287_v55 = vrot.slane %v1541_v16, 7  ;;  %s1149_s4 = smul.u32 6, %s1357_s9  ;;  %s1010_s20 = scalar_lea.sflag [#allocation4], %s1487_s28 }
  0x2a   : > { %v157_v3 = vadd.s32 8, %v1497_v1  ;;  %vm160_vm0 = vcmp.ge.s32.totalorder %v1497_v1, 1  ;;  %vm166_vm1 = vcmp.ge.s32.totalorder %v159_v2, 1  ;;  %vm169_vm2 = vcmp.le.s32.totalorder %v159_v2, 126  ;;  %s2215_s30 = scalar_lea.vmem [#allocation5], %s1148_s26  ;;  %s1150_s5 = smul.u32 18, %s1361_s10 }
  0x2b   : > { %vm167_vm3 = vmand %vm160_vm0, %vm166_vm1  ;;  %vm184_vm6 = vcmp.lt.s32.totalorder %v1497_v1, 1  ;;  %vm189_vm7 = vcmp.lt.s32.totalorder %v1497_v1, 7  ;;  %v217_v21 = vrot.slane %v201_v14, 7  ;;  %v221_v22 = vrot.slane %v201_v14, 1  ;;  %226 = vrot.lane.b32.xlu2 %v200_v17, %s1378_s21  ;;  %s1024_s23 = sshll.u32 %s2215_s30, 4  ;;  %s1025_s23 = int_to_ptr.vmem [resolvable:$true] %s1024_s23 }
  0x2c   : > { %vm163_vm4 = vcmp.le.s32.totalorder %v157_v3, 14  ;;  %vm1503_vm5 = vmand %vm167_vm3, %vm169_vm2  ;;  %v186_v18 = vsel %vm184_vm6, %v183_v11, %v182_v10  ;;  %v190_v19 = vsel %vm189_vm7, %v187_v12, %v188_v13  ;;  %v216_v24 = vrot.slane %v200_v17, 7  ;;  %s1021_s14 = sadd.s32 %s1150_s5, %s1149_s4 }
  0x2d   : > { %vm168_vm8 = vmand %vm163_vm4, %vm166_vm1  ;;  %v1552_v23 = vadd.f32 %v190_v19, %v186_v18  ;;  %v220_v25 = vrot.slane %v200_v17, 1  ;;  %v185_v26 = vsel %vm184_vm6, %v182_v10, %v183_v11  ;;  %v191_v27 = vsel %vm189_vm7, %v188_v13, %v187_v12  ;;  %s1141_s9 = sshll.u32 %s1021_s14, 3 }
  0x2e   : > { %vm1536_vm9 = vmand %vm168_vm8, %vm169_vm2  ;;  %v1559_v28 = vadd.f32 %v191_v27, %v185_v26  ;;  %v218_v30 = vsel %vm184_vm6, %v216_v24, %v217_v21  ;;  %v219_v31 = vsel %vm184_vm6, %v217_v21, %v216_v24  ;;  %v319_v36 = vrot.slane %v1563_v29, 7  ;;  %s1023_s19 = scalar_lea.hbm %s2508_s1, %s1141_s9 }
  0x2f   : > { %v222_v32 = vsel %vm189_vm7, %v220_v25, %v221_v22  ;;  %v223_v33 = vsel %vm189_vm7, %v221_v22, %v220_v25  ;;  %198 = vrot.lane.b32.xlu1 %v1511_v6, %s1377_s17  ;;  %194 = vrot.lane.b32.xlu0 %v1511_v6, %s1378_s21  ;;  %v323_v40 = vrot.slane %v1563_v29, 1  ;;  %v304_v41 = vsub.f32 %v1579_v37, %v1511_v6  ;;  %s1026_s18 = sshll.u32 %s1023_s19, 4  ;;  %s1027_s18 = int_to_ptr.hbm [resolvable:$true] %s1026_s18 }
  0x30   : > { %v224_v34 = vsub.f32 %v219_v31, %v222_v32  ;;  %v225_v35 = vsub.f32 %v218_v30, %v223_v33  ;;  %v288_v56 = vrot.slane %v1523_v8, 7  ;;  %v291_v57 = vrot.slane %v1541_v16, 1  ;;  %s1289_s24 = sshra.s32 %s1027_s18, 4  ;;  %s1290_s24 = int_to_ptr.hbm [resolvable:$true] %s1289_s24 }
  0x31   : > { %v320_v44 = vrot.slane %v304_v41, 7  ;;  %v324_v45 = vrot.slane %v304_v41, 1  ;;  %v292_v58 = vrot.slane %v1523_v8, 1  ;;  %v202_v59 = vsub.f32 %v186_v18, %v190_v19  ;;  %v1639_v18 = vld [vmem:[%s1491_s3 + $0x48] sm:$0xff]  ;;  %s1291_s29 = scalar_lea.hbm %s1290_s24, 48  ;;  %p1296_p7 = scmp.lt.s32.totalorder %s1290_s24, %s2508_s1 }
  0x32   : > { %v261_v38 = vmul.f32 %v224_v34, %v224_v34  ;;  %v262_v39 = vmul.f32 %v225_v35, %v225_v35  ;;  %v290_v63 = vsel %vm184_vm6, %v288_v56, %v287_v55  ;;  %v203_v2 = vsub.f32 %v185_v26, %v191_v27  ;;  %p1292_p4 = scmp.ne.s32.totalorder %s1290_s24, %s1291_s29 }
  0x33   : > { %228 = vrot.lane.b32.xlu2 %v201_v14, %s1378_s21  ;;  %v321_v47 = vsel %vm184_vm6, %v319_v36, %v320_v44  ;;  %v322_v48 = vsel %vm184_vm6, %v320_v44, %v319_v36  ;;  %v325_v49 = vsel %vm189_vm7, %v323_v40, %v324_v45  ;;  %v326_v50 = vsel %vm189_vm7, %v324_v45, %v323_v40 }
  0x34   : > { %v263_v42 = vsel %vm1503_vm5, %v261_v38, 0.0  ;;  %v264_v43 = vsel %vm1536_vm9, %v262_v39, 0.0  ;;  %v327_v51 = vsub.f32 %v322_v48, %v325_v49  ;;  %v328_v52 = vsub.f32 %v321_v47, %v326_v50  ;;  %p1293_p5 = pnand %p1292_p4, %p1456_p9 }
  0x35   : > { %v265_v46 = vadd.f32 %v264_v43, %v263_v42  ;;  %v293_v0 = vsel %vm189_vm7, %v291_v57, %v292_v58  ;;  %v289_v11 = vsel %vm184_vm6, %v287_v55, %v288_v56  ;;  %v294_v12 = vsel %vm189_vm7, %v292_v58, %v291_v57 }
  0x36   : > { %v364_v53 = vmul.f32 %v327_v51, %v327_v51  ;;  %v365_v54 = vmul.f32 %v328_v52, %v328_v52  ;;  %v1612_v3 = vadd.f32 %v293_v0, %v290_v63  ;;  %v1620_v13 = vadd.f32 %v294_v12, %v289_v11  ;;  %v1686_v52 = vld [vmem:[%s1491_s3 + $0x50] sm:$0xff]  ;;  %p1294_p6 = pneg %p1293_p5 }
  0x37   : > { %232 = vrot.lane.b32.xlu1 %v201_v14, %s1377_s17  ;;  %230 = vrot.lane.b32.xlu0 %v200_v17, %s1377_s17  ;;  %v1630_v14 = vld [vmem:[%s1491_s3 + $0x40] sm:$0xff]  ;;  %v407_v22 = vsub.f32 %v1639_v18, %v1523_v8  ;;  %v390_v36 = vrot.slane %v1550_v20, 7  ;;  %v391_v38 = vrot.slane %v1579_v37, 7  ;;  %v394_v39 = vrot.slane %v1550_v20, 1 }
  0x38   : > { %v366_v60 = vsel %vm1503_vm5, %v364_v53, 0.0  ;;  %v367_v61 = vsel %vm1536_vm9, %v365_v54, 0.0  ;;  %v406_v17 = vsub.f32 %v1630_v14, %v1541_v16  ;;  %v395_v40 = vrot.slane %v1579_v37, 1  ;;  %v1696_v54 = vld [vmem:[%s1491_s3 + $0x58] sm:$0xff] }
  0x39   : > { %v368_v62 = vadd.f32 %v367_v61, %v366_v60  ;;  %v423_v24 = vrot.slane %v407_v22, 7  ;;  %v427_v25 = vrot.slane %v407_v22, 1  ;;  %v305_v42 = vsub.f32 %v290_v63, %v293_v0 }
  0x3a   : > { %v422_v19 = vrot.slane %v406_v17, 7  ;;  %v426_v21 = vrot.slane %v406_v17, 1  ;;  %v396_v45 = vsel %vm189_vm7, %v394_v39, %v395_v40  ;;  %v392_v49 = vsel %vm184_vm6, %v390_v36, %v391_v38 }
  0x3b   : > { %236 = vrot.lane.b32.xlu2 %v202_v59, %s1378_s21  ;;  %v382_v10 = vadd.f32 %v368_v62, %v265_v46  ;;  %v306_v46 = vsub.f32 %v289_v11, %v294_v12  ;;  %v397_v50 = vsel %vm189_vm7, %v395_v40, %v394_v39  ;;  %v1690_v53 = vsub.f32 %v1686_v52, %v1550_v20 }
  0x3c   : > { %v424_v26 = vsel %vm184_vm6, %v422_v19, %v423_v24  ;;  %v425_v27 = vsel %vm184_vm6, %v423_v24, %v422_v19  ;;  %v428_v30 = vsel %vm189_vm7, %v426_v21, %v427_v25  ;;  %v429_v31 = vsel %vm189_vm7, %v427_v25, %v426_v21 }
  0x3d   : > { %v430_v32 = vsub.f32 %v425_v27, %v428_v30  ;;  %v431_v33 = vsub.f32 %v424_v26, %v429_v31  ;;  %v1676_v51 = vadd.f32 %v397_v50, %v392_v49  ;;  %v525_v55 = vrot.slane %v1690_v53, 7 }
  0x3e   : > { %v529_v56 = vrot.slane %v1690_v53, 1  ;;  %v1702_v57 = vsub.f32 %v1696_v54, %v1579_v37  ;;  %v204_v12 = vadd.f32 %v1541_v16, %v1527_v9  ;;  %v493_v26 = vrot.slane %v1630_v14, 7 }
  0x3f   : > { %240 = vrot.lane.b32.xlu1 %v202_v59, %s1377_s17  ;;  %238 = vrot.lane.b32.xlu0 %v203_v2, %s1378_s21  ;;  %v467_v34 = vmul.f32 %v430_v32, %v430_v32  ;;  %v468_v35 = vmul.f32 %v431_v33, %v431_v33  ;;  %v494_v27 = vrot.slane %v1639_v18, 7  ;;  %v497_v9 = vrot.slane %v1630_v14, 1 }
  0x40   : > { %v526_v58 = vrot.slane %v1702_v57, 7  ;;  %v530_v59 = vrot.slane %v1702_v57, 1  ;;  %v498_v30 = vrot.slane %v1639_v18, 1 }
  0x41   : > { %v469_v43 = vsel %vm1503_vm5, %v467_v34, 0.0  ;;  %v205_v34 = vadd.f32 %v1523_v8, %v1514_v7 }
  0x42   : > { %v527_v60 = vsel %vm184_vm6, %v525_v55, %v526_v58  ;;  %v528_v61 = vsel %vm184_vm6, %v526_v58, %v525_v55  ;;  %v531_v62 = vsel %vm189_vm7, %v529_v56, %v530_v59  ;;  %v532_v63 = vsel %vm189_vm7, %v530_v59, %v529_v56  ;;  %v1786_v56 = vld [vmem:[%s1491_s3 + $0x60] sm:$0xff]  ;;  %v1795_v59 = vld [vmem:[%s1491_s3 + $0x68] sm:$0xff] }
  0x43   : > { %242 = vrot.lane.b32.xlu2 %v203_v2, %s1377_s17  ;;  %v533_v0 = vsub.f32 %v528_v61, %v531_v62  ;;  %v534_v2 = vsub.f32 %v527_v60, %v532_v63  ;;  %v1792_v58 = vsub.f32 %v1786_v56, %v1630_v14  ;;  %v1803_v63 = vsub.f32 %v1795_v59, %v1639_v18 }
  0x45   : > { %v571_v11 = vmul.f32 %v534_v2, %v534_v2  ;;  %v628_v61 = vrot.slane %v1792_v58, 7  ;;  %v632_v62 = vrot.slane %v1792_v58, 1  ;;  %v633_v2 = vrot.slane %v1803_v63, 1 }
  0x47   : > { %297 = vrot.lane.b32.xlu1 %v1523_v8, %s1378_s21  ;;  %295 = vrot.lane.b32.xlu0 %v1541_v16, %s1378_s21  ;;  %v573_v24 = vsel %vm1536_vm9, %v571_v11, 0.0 }
  0x4b   : > { %299 = vrot.lane.b32.xlu2 %v1541_v16, %s1377_s17 }
  0x4f   : > { %329 = vrot.lane.b32.xlu1 %v1563_v29, %s1378_s21  ;;  %301 = vrot.lane.b32.xlu0 %v1523_v8, %s1377_s17 }
  0x53   : > { %331 = vrot.lane.b32.xlu2 %v304_v41, %s1378_s21 }
  0x57   : > { %335 = vrot.lane.b32.xlu1 %v304_v41, %s1377_s17  ;;  %333 = vrot.lane.b32.xlu0 %v1563_v29, %s1377_s17  ;;  %v470_v41 = vsel %vm1536_vm9, %v468_v35, 0.0  ;;  %v393_v29 = vsel %vm184_vm6, %v391_v38, %v390_v36  ;;  %v496_v35 = vsel %vm184_vm6, %v494_v27, %v493_v26  ;;  %v495_v36 = vsel %vm184_vm6, %v493_v26, %v494_v27 }
  0x58   : > { %v471_v44 = vadd.f32 %v470_v41, %v469_v43  ;;  %v1668_v47 = vadd.f32 %v396_v45, %v393_v29  ;;  %v408_v19 = vsub.f32 %v393_v29, %v396_v45  ;;  %v500_v38 = vsel %vm189_vm7, %v498_v30, %v497_v9 }
  0x59   : > { %v1750_v39 = vadd.f32 %v500_v38, %v495_v36 }
  0x5a   : > { %v485_v48 = vadd.f32 %v471_v44, %v382_v10  ;;  %v570_v10 = vmul.f32 %v533_v0, %v533_v0  ;;  %v629_v0 = vrot.slane %v1803_v63, 7 }
  0x5b   : > { %339 = vrot.lane.b32.xlu2 %v305_v42, %s1378_s21 }
  0x5c   : > { %v572_v21 = vsel %vm1503_vm5, %v570_v10, 0.0 }
  0x5d   : > { %v574_v25 = vadd.f32 %v573_v24, %v572_v21  ;;  %v631_v21 = vsel %vm184_vm6, %v629_v0, %v628_v61  ;;  %v634_v24 = vsel %vm189_vm7, %v632_v62, %v633_v2 }
  0x5e   : > { %v636_v26 = vsub.f32 %v631_v21, %v634_v24 }
  0x5f   : > { %343 = vrot.lane.b32.xlu1 %v305_v42, %s1377_s17  ;;  %341 = vrot.lane.b32.xlu0 %v306_v46, %s1378_s21  ;;  %v1731_v31 = vadd.f32 %v574_v25, %v485_v48  ;;  %v1753_v42 = vmul.f32 2.0, %v1511_v6  ;;  %v512_v25 = vsub.f32 %v495_v36, %v500_v38  ;;  %v601_v36 = vrot.slane %v1696_v54, 1 }
  0x61   : > { %v207_v43 = vsub.f32 %v205_v34, %v1753_v42  ;;  %v211_v41 = vsub.f32 %v1559_v28, %v1753_v42 }
  0x63   : > { %345 = vrot.lane.b32.xlu2 %v306_v46, %s1377_s17  ;;  %v247_v46 = vmul.f32 %v207_v43, %v207_v43  ;;  %v252_v6 = vmul.f32 %v211_v41, %v211_v41 }
  0x65   : > { %v249_v28 = vsel %vm1536_vm9, %v247_v46, 0.0  ;;  %v254_v48 = vsel %vm1536_vm9, %v252_v6, 0.0 }
  0x67   : > { %400 = vrot.lane.b32.xlu1 %v1579_v37, %s1378_s21  ;;  %398 = vrot.lane.b32.xlu0 %v1550_v20, %s1378_s21 }
  0x6b   : > { %402 = vrot.lane.b32.xlu2 %v1550_v20, %s1377_s17 }
  0x6f   : > { %432 = vrot.lane.b32.xlu1 %v406_v17, %s1378_s21  ;;  %404 = vrot.lane.b32.xlu0 %v1579_v37, %s1377_s17 }
  0x73   : > { %434 = vrot.lane.b32.xlu2 %v407_v22, %s1378_s21 }
  0x77   : > { %438 = vrot.lane.b32.xlu1 %v407_v22, %s1377_s17  ;;  %436 = vrot.lane.b32.xlu0 %v406_v17, %s1377_s17  ;;  %v409_v22 = vsub.f32 %v392_v49, %v397_v50  ;;  %v1727_v17 = vmul.f32 2.0, %v1508_v5  ;;  %v499_v5 = vsel %vm189_vm7, %v497_v9, %v498_v30  ;;  %v596_v9 = vrot.slane %v1686_v52, 7 }
  0x78   : > { %v511_v10 = vsub.f32 %v496_v35, %v499_v5  ;;  %v597_v30 = vrot.slane %v1696_v54, 7 }
  0x79   : > { %v206_v32 = vsub.f32 %v204_v12, %v1727_v17  ;;  %v210_v33 = vsub.f32 %v1552_v23, %v1727_v17  ;;  %v1748_v23 = vadd.f32 %v499_v5, %v496_v35 }
  0x7b   : > { %442 = vrot.lane.b32.xlu2 %v408_v19, %s1378_s21  ;;  %v246_v7 = vmul.f32 %v206_v32, %v206_v32  ;;  %v251_v40 = vmul.f32 %v210_v33, %v210_v33  ;;  %v600_v32 = vrot.slane %v1686_v52, 1  ;;  %v673_v33 = vmul.f32 %v636_v26, %v636_v26 }
  0x7d   : > { %v248_v44 = vsel %vm1503_vm5, %v246_v7, 0.0  ;;  %v253_v29 = vsel %vm1503_vm5, %v251_v40, 0.0  ;;  %v675_v38 = vsel %vm1503_vm5, %v673_v33, 0.0  ;;  %v599_v40 = vsel %vm184_vm6, %v597_v30, %v596_v9 }
  0x7e   : > { %v1773_v49 = vadd.f32 %v249_v28, %v248_v44  ;;  %v1775_v50 = vadd.f32 %v254_v48, %v253_v29  ;;  %v602_v43 = vsel %vm189_vm7, %v600_v32, %v601_v36  ;;  %v598_v44 = vsel %vm184_vm6, %v596_v9, %v597_v30 }
  0x7f   : > { %446 = vrot.lane.b32.xlu1 %v408_v19, %s1377_s17  ;;  %444 = vrot.lane.b32.xlu0 %v409_v22, %s1378_s21  ;;  %v630_v19 = vsel %vm184_vm6, %v628_v61, %v629_v0  ;;  %v1840_v41 = vadd.f32 %v602_v43, %v599_v40  ;;  %v603_v48 = vsel %vm189_vm7, %v601_v36, %v600_v32  ;;  %v1850_v61 = vmul.f32 2.0, %v1523_v8 }
  0x80   : > { %v1852_v0 = vadd.f32 %v603_v48, %v598_v44 }
  0x83   : > { %448 = vrot.lane.b32.xlu2 %v409_v22, %s1377_s17  ;;  %v1821_v22 = vmul.f32 2.0, %v1541_v16 }
  0x85   : > { %v1763_v45 = vpop.permute.xlu2 %226  ;;  %v313_v5 = vsub.f32 %v1612_v3, %v1821_v22 }
  0x87   : > { %503 = vrot.lane.b32.xlu1 %v1639_v18, %s1378_s21  ;;  %501 = vrot.lane.b32.xlu0 %v1630_v14, %s1378_s21  ;;  %v354_v28 = vmul.f32 %v313_v5, %v313_v5 }
  0x8b   : > { %505 = vrot.lane.b32.xlu2 %v1630_v14, %s1377_s17 }
  0x8d   : > { %v1779_v55 = vpop.permute.xlu2 %228 }
  0x8f   : > { %535 = vrot.lane.b32.xlu1 %v1690_v53, %s1378_s21  ;;  %507 = vrot.lane.b32.xlu0 %v1639_v18, %s1377_s17 }
  0x93   : > { %537 = vrot.lane.b32.xlu2 %v1702_v57, %s1378_s21 }
  0x95   : > { %v1797_v60 = vpop.permute.xlu2 %236 }
  0x97   : > { %541 = vrot.lane.b32.xlu1 %v1702_v57, %s1377_s17  ;;  %539 = vrot.lane.b32.xlu0 %v1690_v53, %s1377_s17  ;;  %v635_v57 = vsel %vm189_vm7, %v633_v2, %v632_v62 }
  0x98   : > { %v637_v27 = vsub.f32 %v630_v19, %v635_v57 }
  0x99   : > { %v197_v11 = vpop.permute.xlu1 %196  ;;  %v193_v12 = vpop.permute.xlu0 %192 }
  0x9a   : > { %v212_v53 = vadd.f32 %v197_v11, %v193_v12  ;;  %v674_v34 = vmul.f32 %v637_v27, %v637_v27 }
  0x9b   : > { %545 = vrot.lane.b32.xlu2 %v511_v10, %s1378_s21 }
  0x9c   : > { %v676_v16 = vsel %vm1536_vm9, %v674_v34, 0.0  ;;  %v214_v3 = vsub.f32 %v212_v53, %v1727_v17  ;;  %v314_v17 = vsub.f32 %v1620_v13, %v1850_v61 }
  0x9d   : > { %v243_v35 = vpop.permute.xlu2 %242  ;;  %v677_v7 = vadd.f32 %v676_v16, %v675_v38 }
  0x9e   : > { %v256_v2 = vmul.f32 %v214_v3, %v214_v3  ;;  %v355_v12 = vmul.f32 %v314_v17, %v314_v17  ;;  %v615_v17 = vsub.f32 %v598_v44, %v603_v48 }
  0x9f   : > { %549 = vrot.lane.b32.xlu1 %v511_v10, %s1377_s17  ;;  %547 = vrot.lane.b32.xlu0 %v512_v25, %s1378_s21  ;;  %v1845_v6 = vadd.f32 %v677_v7, %v1731_v31  ;;  %v356_v31 = vsel %vm1503_vm5, %v354_v28, 0.0  ;;  %v614_v28 = vsub.f32 %v599_v40, %v602_v43 }
  0xa0   : > { %v357_v8 = vsel %vm1536_vm9, %v355_v12, 0.0  ;;  %v258_v13 = vsel %vm1503_vm5, %v256_v2, 0.0  ;;  %v1908_v2 = vmul.f32 2.0, %v1550_v20  ;;  %v703_v12 = vrot.slane %v1786_v56, 1 }
  0xa1   : > { %v199_v29 = vpop.permute.xlu1 %198  ;;  %v195_v46 = vpop.permute.xlu0 %194  ;;  %v358_v21 = vadd.f32 %v357_v8, %v356_v31  ;;  %v700_v31 = vrot.slane %v1795_v59, 7 }
  0xa2   : > { %v213_v62 = vadd.f32 %v199_v29, %v195_v46 }
  0xa3   : > { %551 = vrot.lane.b32.xlu2 %v512_v25, %s1377_s17  ;;  %v1875_v27 = vadd.f32 %v358_v21, %v1775_v50 }
  0xa4   : > { %v215_v10 = vsub.f32 %v213_v62, %v1753_v42 }
  0xa5   : > { %v300_v11 = vpop.permute.xlu2 %299 }
  0xa6   : > { %v257_v19 = vmul.f32 %v215_v10, %v215_v10  ;;  %v699_v10 = vrot.slane %v1786_v56, 7 }
  0xa7   : > { %606 = vrot.lane.b32.xlu1 %v1696_v54, %s1378_s21  ;;  %604 = vrot.lane.b32.xlu0 %v1686_v52, %s1378_s21 }
  0xa8   : > { %v259_v42 = vsel %vm1536_vm9, %v257_v19, 0.0  ;;  %v704_v19 = vrot.slane %v1795_v59, 1  ;;  %v702_v20 = vsel %vm184_vm6, %v700_v31, %v699_v10  ;;  %v701_v8 = vsel %vm184_vm6, %v699_v10, %v700_v31  ;;  %v1973_v31 = vld [vmem:[%s1491_s3 + $0x78] sm:$0xff] }
  0xa9   : > { %v1870_v24 = vadd.f32 %v259_v42, %v258_v13  ;;  %v233_v57 = vpop.permute.xlu1 %232  ;;  %v231_v53 = vpop.permute.xlu0 %230 }
  0xaa   : > { %v235_v25 = vsub.f32 %v1779_v55, %v233_v57  ;;  %v234_v26 = vsub.f32 %v1763_v45, %v231_v53  ;;  %v705_v43 = vsel %vm189_vm7, %v703_v12, %v704_v19  ;;  %v1932_v57 = vmul.f32 2.0, %v1579_v37 }
  0xab   : > { %608 = vrot.lane.b32.xlu2 %v1686_v52, %s1377_s17 }
  0xac   : > { %v272_v9 = vmul.f32 %v235_v25, %v235_v25  ;;  %v271_v30 = vmul.f32 %v234_v26, %v234_v26  ;;  %v417_v26 = vsub.f32 %v1676_v51, %v1932_v57 }
  0xad   : > { %v1879_v32 = vpop.permute.xlu2 %331 }
  0xae   : > { %v274_v33 = vsel %vm1536_vm9, %v272_v9, 0.0  ;;  %v273_v34 = vsel %vm1503_vm5, %v271_v30, 0.0 }
  0xaf   : > { %v1885_v5 = vadd.f32 %v274_v33, %v273_v34  ;;  %638 = vrot.lane.b32.xlu1 %v1792_v58, %s1378_s21  ;;  %610 = vrot.lane.b32.xlu0 %v1696_v54, %s1377_s17  ;;  %v458_v34 = vmul.f32 %v417_v26, %v417_v26 }
  0xb1   : > { %v241_v45 = vpop.permute.xlu1 %240  ;;  %v239_v50 = vpop.permute.xlu0 %238  ;;  %v460_v51 = vsel %vm1536_vm9, %v458_v34, 0.0 }
  0xb2   : > { %v244_v55 = vsub.f32 %v1797_v60, %v241_v45  ;;  %v245_v36 = vsub.f32 %v239_v50, %v243_v35  ;;  %v1949_v50 = vld [vmem:[%s1491_s3 + $0x70] sm:$0xff] }
  0xb3   : > { %640 = vrot.lane.b32.xlu2 %v1803_v63, %s1378_s21 }
  0xb4   : > { %v266_v38 = vmul.f32 %v244_v55, %v244_v55  ;;  %v267_v16 = vmul.f32 %v245_v36, %v245_v36 }
  0xb5   : > { %v1894_v7 = vpop.permute.xlu2 %339 }
  0xb6   : > { %v268_v3 = vsel %vm1503_vm5, %v266_v38, 0.0  ;;  %v269_v29 = vsel %vm1536_vm9, %v267_v16, 0.0 }
  0xb7   : > { %v1900_v46 = vadd.f32 %v269_v29, %v268_v3  ;;  %644 = vrot.lane.b32.xlu1 %v1803_v63, %s1377_s17  ;;  %642 = vrot.lane.b32.xlu0 %v1792_v58, %s1377_s17  ;;  %v416_v58 = vsub.f32 %v1668_v47, %v1908_v2  ;;  %v706_v47 = vsel %vm189_vm7, %v704_v19, %v703_v12 }
  0xb8   : > { %v1929_v21 = vadd.f32 %v706_v47, %v701_v8 }
  0xb9   : > { %v298_v60 = vpop.permute.xlu1 %297  ;;  %v296_v35 = vpop.permute.xlu0 %295  ;;  %v457_v42 = vmul.f32 %v416_v58, %v416_v58 }
  0xba   : > { %v315_v62 = vadd.f32 %v300_v11, %v296_v35  ;;  %v1923_v11 = vadd.f32 %v705_v43, %v702_v20  ;;  %v1959_v35 = vsub.f32 %v1949_v50, %v1686_v52 }
  0xbb   : > { %648 = vrot.lane.b32.xlu2 %v614_v28, %s1378_s21  ;;  %v459_v33 = vsel %vm1503_vm5, %v457_v42, 0.0 }
  0xbc   : > { %v317_v40 = vsub.f32 %v315_v62, %v1821_v22  ;;  %v461_v16 = vadd.f32 %v460_v51, %v459_v33  ;;  %v717_v33 = vsub.f32 %v702_v20, %v705_v43  ;;  %v802_v51 = vrot.slane %v1949_v50, 7 }
  0xbd   : > { %v346_v63 = vpop.permute.xlu2 %345  ;;  %v806_v20 = vrot.slane %v1949_v50, 1  ;;  %v807_v43 = vrot.slane %v1973_v31, 1 }
  0xbe   : > { %v359_v53 = vmul.f32 %v317_v40, %v317_v40  ;;  %v716_v40 = vsub.f32 %v1973_v31, %v1696_v54 }
  0xbf   : > { %652 = vrot.lane.b32.xlu1 %v614_v28, %s1377_s17  ;;  %650 = vrot.lane.b32.xlu0 %v615_v17, %s1378_s21  ;;  %v1964_v28 = vadd.f32 %v461_v16, %v1875_v27  ;;  %v735_v16 = vrot.slane %v1959_v35, 1 }
  0xc0   : > { %v361_v37 = vsel %vm1503_vm5, %v359_v53, 0.0 }
  0xc1   : > { %v330_v44 = vpop.permute.xlu1 %329  ;;  %v302_v48 = vpop.permute.xlu0 %301 }
  0xc2   : > { %v316_v13 = vadd.f32 %v302_v48, %v298_v60 }
  0xc3   : > { %654 = vrot.lane.b32.xlu2 %v615_v17, %s1377_s17 }
  0xc4   : > { %v318_v25 = vsub.f32 %v316_v13, %v1850_v61 }
  0xc5   : > { %v403_v9 = vpop.permute.xlu2 %402 }
  0xc6   : > { %v360_v30 = vmul.f32 %v318_v25, %v318_v25 }
  0xc7   : > { %709 = vrot.lane.b32.xlu1 %v1795_v59, %s1378_s21  ;;  %707 = vrot.lane.b32.xlu0 %v1786_v56, %s1378_s21 }
  0xc8   : > { %v362_v45 = vsel %vm1536_vm9, %v360_v30, 0.0 }
  0xc9   : > { %v363_v55 = vadd.f32 %v362_v45, %v361_v37  ;;  %v336_v36 = vpop.permute.xlu1 %335  ;;  %v334_v38 = vpop.permute.xlu0 %333  ;;  %v718_v37 = vsub.f32 %v701_v8, %v706_v47  ;;  %v2000_v45 = vmul.f32 2.0, %v1630_v14  ;;  %v731_v8 = vrot.slane %v1959_v35, 7 }
  0xca   : > { %v338_v3 = vsub.f32 %v1879_v32, %v336_v36  ;;  %v337_v29 = vsub.f32 %v330_v44, %v334_v38  ;;  %v732_v47 = vrot.slane %v716_v40, 7 }
  0xcb   : > { %v1955_v60 = vadd.f32 %v363_v55, %v1870_v24  ;;  %711 = vrot.lane.b32.xlu2 %v1786_v56, %s1377_s17  ;;  %v803_v55 = vrot.slane %v1973_v31, 7 }
  0xcc   : > { %v375_v62 = vmul.f32 %v338_v3, %v338_v3  ;;  %v374_v17 = vmul.f32 %v337_v29, %v337_v29  ;;  %v736_v3 = vrot.slane %v716_v40, 1 }
  0xcd   : > { %v1966_v10 = vpop.permute.xlu2 %434  ;;  %v2019_v38 = vsel %vm184_vm6, %v803_v55, %v802_v51 }
  0xce   : > { %v377_v32 = vsel %vm1536_vm9, %v375_v62, 0.0  ;;  %v376_v24 = vsel %vm1503_vm5, %v374_v17, 0.0  ;;  %v2027_v17 = vld [vmem:[%s1491_s3 + $0x88] sm:$0xff] }
  0xcf   : > { %v378_v12 = vadd.f32 %v377_v32, %v376_v24  ;;  %741 = vrot.lane.b32.xlu1 %v1959_v35, %s1378_s21  ;;  %713 = vrot.lane.b32.xlu0 %v1795_v59, %s1377_s17 }
  0xd1   : > { %v1980_v27 = vadd.f32 %v378_v12, %v1885_v5  ;;  %v344_v19 = vpop.permute.xlu1 %343  ;;  %v342_v58 = vpop.permute.xlu0 %341 }
  0xd2   : > { %v347_v44 = vsub.f32 %v1894_v7, %v344_v19  ;;  %v348_v48 = vsub.f32 %v342_v58, %v346_v63  ;;  %v2035_v19 = vsel %vm184_vm6, %v802_v51, %v803_v55  ;;  %v2039_v58 = vsel %vm189_vm7, %v807_v43, %v806_v20 }
  0xd3   : > { %743 = vrot.lane.b32.xlu2 %v716_v40, %s1378_s21 }
  0xd4   : > { %v369_v13 = vmul.f32 %v347_v44, %v347_v44  ;;  %v370_v42 = vmul.f32 %v348_v48, %v348_v48  ;;  %v2053_v48 = vadd.f32 %v2039_v58, %v2035_v19 }
  0xd5   : > { %v1986_v53 = vpop.permute.xlu2 %442 }
  0xd6   : > { %v371_v25 = vsel %vm1503_vm5, %v369_v13, 0.0  ;;  %v372_v5 = vsel %vm1536_vm9, %v370_v42, 0.0 }
  0xd7   : > { %v373_v26 = vadd.f32 %v372_v5, %v371_v25  ;;  %747 = vrot.lane.b32.xlu1 %v716_v40, %s1377_s17  ;;  %745 = vrot.lane.b32.xlu0 %v1959_v35, %s1377_s17  ;;  %v2042_v35 = vmul.f32 2.0, %v1639_v18  ;;  %v733_v40 = vsel %vm184_vm6, %v731_v8, %v732_v47  ;;  %v2058_v18 = vsub.f32 %v2027_v17, %v1795_v59 }
  0xd8   : > { %v734_v5 = vsel %vm184_vm6, %v732_v47, %v731_v8 }
  0xd9   : > { %v1996_v7 = vadd.f32 %v373_v26, %v1900_v46  ;;  %v401_v63 = vpop.permute.xlu1 %400  ;;  %v399_v30 = vpop.permute.xlu0 %398  ;;  %v519_v46 = vsub.f32 %v1748_v23, %v2000_v45  ;;  %v2023_v23 = vsel %vm189_vm7, %v806_v20, %v807_v43  ;;  %v520_v25 = vsub.f32 %v1750_v39, %v2042_v35 }
  0xda   : > { %v418_v34 = vadd.f32 %v403_v9, %v399_v30  ;;  %v2015_v9 = vld [vmem:[%s1491_s3 + $0x80] sm:$0xff]  ;;  %v2031_v24 = vadd.f32 %v2023_v23, %v2019_v38  ;;  %v737_v26 = vsel %vm189_vm7, %v735_v16, %v736_v3 }
  0xdb   : > { %751 = vrot.lane.b32.xlu2 %v717_v33, %s1378_s21  ;;  %v560_v32 = vmul.f32 %v519_v46, %v519_v46  ;;  %v2048_v44 = vsub.f32 %v2015_v9, %v1786_v56  ;;  %v561_v39 = vmul.f32 %v520_v25, %v520_v25  ;;  %v839_v46 = vrot.slane %v2058_v18, 1 }
  0xdc   : > { %v420_v14 = vsub.f32 %v418_v34, %v1908_v2  ;;  %v739_v47 = vsub.f32 %v734_v5, %v737_v26 }
  0xdd   : > { %v2004_v36 = vpop.permute.xlu2 %448  ;;  %v834_v30 = vrot.slane %v2048_v44, 7  ;;  %v562_v51 = vsel %vm1503_vm5, %v560_v32, 0.0  ;;  %v838_v55 = vrot.slane %v2048_v44, 1  ;;  %v563_v8 = vsel %vm1536_vm9, %v561_v39, 0.0 }
  0xde   : > { %v462_v13 = vmul.f32 %v420_v14, %v420_v14  ;;  %v564_v32 = vadd.f32 %v563_v8, %v562_v51 }
  0xdf   : > { %755 = vrot.lane.b32.xlu1 %v717_v33, %s1377_s17  ;;  %753 = vrot.lane.b32.xlu0 %v718_v37, %s1378_s21  ;;  %v840_v5 = vsel %vm189_vm7, %v838_v55, %v839_v46 }
  0xe0   : > { %v464_v20 = vsel %vm1503_vm5, %v462_v13, 0.0 }
  0xe1   : > { %v433_v29 = vpop.permute.xlu1 %432  ;;  %v405_v62 = vpop.permute.xlu0 %404 }
  0xe2   : > { %v419_v12 = vadd.f32 %v405_v62, %v401_v63  ;;  %v738_v63 = vsel %vm189_vm7, %v736_v3, %v735_v16 }
  0xe3   : > { %757 = vrot.lane.b32.xlu2 %v718_v37, %s1377_s17  ;;  %v835_v37 = vrot.slane %v2058_v18, 7  ;;  %v740_v14 = vsub.f32 %v733_v40, %v738_v63  ;;  %v841_v40 = vsel %vm189_vm7, %v839_v46, %v838_v55  ;;  %v776_v63 = vmul.f32 %v739_v47, %v739_v47 }
  0xe4   : > { %v421_v42 = vsub.f32 %v419_v12, %v1932_v57 }
  0xe5   : > { %v2069_v33 = vpop.permute.xlu2 %505  ;;  %v836_v25 = vsel %vm184_vm6, %v834_v30, %v835_v37  ;;  %v837_v13 = vsel %vm184_vm6, %v835_v37, %v834_v30  ;;  %v777_v51 = vmul.f32 %v740_v14, %v740_v14 }
  0xe6   : > { %v463_v34 = vmul.f32 %v421_v42, %v421_v42  ;;  %v842_v39 = vsub.f32 %v837_v13, %v840_v5  ;;  %v843_v55 = vsub.f32 %v836_v25, %v841_v40  ;;  %v2128_v13 = vld [vmem:[%s1491_s3 + $0x98] sm:$0xff] }
  0xe7   : > { %812 = vrot.lane.b32.xlu1 %v1973_v31, %s1378_s21  ;;  %810 = vrot.lane.b32.xlu0 %v1949_v50, %s1378_s21 }
  0xe8   : > { %v465_v43 = vsel %vm1536_vm9, %v463_v34, 0.0 }
  0xe9   : > { %v466_v16 = vadd.f32 %v465_v43, %v464_v20  ;;  %v439_v3 = vpop.permute.xlu1 %438  ;;  %v437_v62 = vpop.permute.xlu0 %436  ;;  %v779_v20 = vsel %vm1536_vm9, %v777_v51, 0.0 }
  0xea   : > { %v441_v12 = vsub.f32 %v1966_v10, %v439_v3  ;;  %v440_v42 = vsub.f32 %v433_v29, %v437_v62  ;;  %v2101_v10 = vadd.f32 %v564_v32, %v1964_v28  ;;  %v778_v28 = vsel %vm1503_vm5, %v776_v63, 0.0  ;;  %v2123_v32 = vld [vmem:[%s1491_s3 + $0x90] sm:$0xff] }
  0xeb   : > { %v2092_v34 = vadd.f32 %v466_v16, %v1955_v60  ;;  %814 = vrot.lane.b32.xlu2 %v1949_v50, %s1377_s17  ;;  %v879_v3 = vmul.f32 %v842_v39, %v842_v39  ;;  %v880_v62 = vmul.f32 %v843_v55, %v843_v55  ;;  %v2134_v5 = vsub.f32 %v2123_v32, %v1949_v50 }
  0xec   : > { %v478_v29 = vmul.f32 %v441_v12, %v441_v12  ;;  %v477_v26 = vmul.f32 %v440_v42, %v440_v42  ;;  %v780_v12 = vadd.f32 %v779_v20, %v778_v28 }
  0xed   : > { %v2103_v30 = vpop.permute.xlu2 %537  ;;  %v881_v40 = vsel %vm1503_vm5, %v879_v3, 0.0  ;;  %v937_v63 = vrot.slane %v2134_v5, 7  ;;  %v941_v51 = vrot.slane %v2134_v5, 1  ;;  %v906_v3 = vrot.slane %v2027_v17, 7 }
  0xee   : > { %v480_v60 = vsel %vm1536_vm9, %v478_v29, 0.0  ;;  %v479_v37 = vsel %vm1503_vm5, %v477_v26, 0.0  ;;  %v882_v29 = vsel %vm1536_vm9, %v880_v62, 0.0  ;;  %v909_v62 = vrot.slane %v2015_v9, 1 }
  0xef   : > { %v481_v46 = vadd.f32 %v480_v60, %v479_v37  ;;  %844 = vrot.lane.b32.xlu1 %v2048_v44, %s1378_s21  ;;  %816 = vrot.lane.b32.xlu0 %v1973_v31, %s1377_s17  ;;  %v2152_v60 = vsub.f32 %v2128_v13, %v1973_v31  ;;  %v794_v37 = vadd.f32 %v780_v12, %v1845_v6  ;;  %v2166_v6 = vmul.f32 2.0, %v1686_v52 }
  0xf0   : > { %v883_v20 = vadd.f32 %v882_v29, %v881_v40  ;;  %v910_v12 = vrot.slane %v2027_v17, 1 }
  0xf1   : > { %v2118_v43 = vadd.f32 %v481_v46, %v1980_v27  ;;  %v447_v8 = vpop.permute.xlu1 %446  ;;  %v445_v47 = vpop.permute.xlu0 %444  ;;  %v942_v28 = vrot.slane %v2152_v60, 1 }
  0xf2   : > { %v450_v14 = vsub.f32 %v1986_v53, %v447_v8  ;;  %v451_v16 = vsub.f32 %v445_v47, %v2004_v36  ;;  %v821_v47 = vsub.f32 %v2035_v19, %v2039_v58  ;;  %v905_v19 = vrot.slane %v2015_v9, 7 }
  0xf3   : > { %846 = vrot.lane.b32.xlu2 %v2058_v18, %s1378_s21  ;;  %v622_v58 = vsub.f32 %v1840_v41, %v2166_v6 }
  0xf4   : > { %v472_v42 = vmul.f32 %v450_v14, %v450_v14  ;;  %v473_v25 = vmul.f32 %v451_v16, %v451_v16  ;;  %v2194_v29 = vsel %vm184_vm6, %v906_v3, %v905_v19 }
  0xf5   : > { %v2130_v27 = vpop.permute.xlu2 %545 }
  0xf6   : > { %v474_v53 = vsel %vm1503_vm5, %v472_v42, 0.0  ;;  %v475_v36 = vsel %vm1536_vm9, %v473_v25, 0.0 }
  0xf7   : > { %v476_v26 = vadd.f32 %v475_v36, %v474_v53  ;;  %850 = vrot.lane.b32.xlu1 %v2058_v18, %s1377_s17  ;;  %848 = vrot.lane.b32.xlu0 %v2048_v44, %s1377_s17  ;;  %v820_v18 = vsub.f32 %v2019_v38, %v2023_v23  ;;  %v938_v44 = vrot.slane %v2152_v60, 7  ;;  %v943_v23 = vsel %vm189_vm7, %v941_v51, %v942_v28 }
  0xf8   : > { %v897_v53 = vadd.f32 %v883_v20, %v794_v37  ;;  %v912_v20 = vsel %vm189_vm7, %v910_v12, %v909_v62 }
  0xf9   : > { %v2156_v39 = vadd.f32 %v476_v26, %v1996_v7  ;;  %v504_v55 = vpop.permute.xlu1 %503  ;;  %v502_v46 = vpop.permute.xlu0 %501  ;;  %v939_v7 = vsel %vm184_vm6, %v937_v63, %v938_v44  ;;  %v940_v38 = vsel %vm184_vm6, %v938_v44, %v937_v63  ;;  %v911_v26 = vsel %vm189_vm7, %v909_v62, %v910_v12 }
  0xfa   : > { %v521_v8 = vadd.f32 %v2069_v33, %v502_v46  ;;  %v944_v33 = vsel %vm189_vm7, %v942_v28, %v941_v51  ;;  %v945_v14 = vsub.f32 %v940_v38, %v943_v23  ;;  %v663_v46 = vmul.f32 %v622_v58, %v622_v58 }
  0xfb   : > { %854 = vrot.lane.b32.xlu2 %v820_v18, %s1378_s21  ;;  %v946_v16 = vsub.f32 %v939_v7, %v944_v33  ;;  %v907_v28 = vsel %vm184_vm6, %v905_v19, %v906_v3 }
  0xfc   : > { %v982_v42 = vmul.f32 %v945_v14, %v945_v14  ;;  %v523_v36 = vsub.f32 %v521_v8, %v2000_v45  ;;  %v2207_v8 = vmul.f32 2.0, %v1696_v54  ;;  %v2210_v38 = vadd.f32 %v912_v20, %v907_v28 }
  0xfd   : > { %v2178_v52 = vpop.permute.xlu2 %551  ;;  %v983_v25 = vmul.f32 %v946_v16, %v946_v16  ;;  %v665_v54 = vsel %vm1503_vm5, %v663_v46, 0.0 }
  0xfe   : > { %v984_v40 = vsel %vm1503_vm5, %v982_v42, 0.0  ;;  %v565_v23 = vmul.f32 %v523_v36, %v523_v36 }
  0xff   : > { %858 = vrot.lane.b32.xlu1 %v820_v18, %s1377_s17  ;;  %856 = vrot.lane.b32.xlu0 %v821_v47, %s1378_s21  ;;  %v985_v41 = vsel %vm1536_vm9, %v983_v25, 0.0  ;;  %v2199_v18 = vadd.f32 %v911_v26, %v2194_v29 }
 0x100   : > { %v986_v37 = vadd.f32 %v985_v41, %v984_v40 }
 0x101   : > { %v536_v63 = vpop.permute.xlu1 %535  ;;  %v508_v51 = vpop.permute.xlu0 %507 }
 0x102   : > { %v522_v44 = vadd.f32 %v508_v51, %v504_v55  ;;  %v1000_v7 = vadd.f32 %v986_v37, %v897_v53  ;;  %v623_v55 = vsub.f32 %v1852_v0, %v2207_v8 }
 0x103   : > { %860 = vrot.lane.b32.xlu2 %v821_v47, %s1377_s17  ;;  %v567_v47 = vsel %vm1503_vm5, %v565_v23, 0.0 }
 0x104   : > { %v524_v33 = vsub.f32 %v522_v44, %v2042_v35  ;;  %1006 = vst [vmem:[%s2215_s30 + $0x18] sm:$0xff] %v1000_v7  ;;  %v664_v16 = vmul.f32 %v623_v55, %v623_v55 }
 0x105   : > { %v609_v14 = vpop.permute.xlu2 %608 }
 0x106   : > { %v566_v1 = vmul.f32 %v524_v33, %v524_v33  ;;  %v666_v19 = vsel %vm1536_vm9, %v664_v16, 0.0 }
 0x107   : > { %915 = vrot.lane.b32.xlu1 %v2027_v17, %s1378_s21  ;;  %913 = vrot.lane.b32.xlu0 %v2015_v9, %s1378_s21  ;;  %v667_v12 = vadd.f32 %v666_v19, %v665_v54  ;;  %v924_v19 = vsub.f32 %v907_v28, %v912_v20 }
 0x108   : > { %v568_v0 = vsel %vm1536_vm9, %v566_v1, 0.0 }
 0x109   : > { %v569_v58 = vadd.f32 %v568_v0, %v567_v47  ;;  %v542_v3 = vpop.permute.xlu1 %541  ;;  %v540_v62 = vpop.permute.xlu0 %539  ;;  %v689_v36 = vadd.f32 %v667_v12, %v2101_v10  ;;  %v923_v47 = vsub.f32 %v2194_v29, %v911_v26  ;;  %v2268_v26 = vmul.f32 2.0, %v1795_v59 }
 0x10a   : > { %v544_v42 = vsub.f32 %v2103_v30, %v542_v3  ;;  %v543_v25 = vsub.f32 %v536_v63, %v540_v62 }
 0x10b   : > { %v587_v53 = vadd.f32 %v569_v58, %v2092_v34  ;;  %917 = vrot.lane.b32.xlu2 %v2015_v9, %s1377_s17  ;;  %v2260_v58 = vmul.f32 2.0, %v1786_v56  ;;  %v726_v20 = vsub.f32 %v1929_v21, %v2268_v26 }
 0x10c   : > { %v581_v40 = vmul.f32 %v544_v42, %v544_v42  ;;  %v580_v41 = vmul.f32 %v543_v25, %v543_v25 }
 0x10d   : > { %v641_v51 = vpop.permute.xlu2 %640  ;;  %v767_v25 = vmul.f32 %v726_v20, %v726_v20 }
 0x10e   : > { %v583_v37 = vsel %vm1536_vm9, %v581_v40, 0.0  ;;  %v582_v46 = vsel %vm1503_vm5, %v580_v41, 0.0 }
 0x10f   : > { %v584_v44 = vadd.f32 %v583_v37, %v582_v46  ;;  %947 = vrot.lane.b32.xlu1 %v2134_v5, %s1378_s21  ;;  %919 = vrot.lane.b32.xlu0 %v2027_v17, %s1377_s17  ;;  %v769_v41 = vsel %vm1536_vm9, %v767_v25, 0.0  ;;  %v1237_v25 = vld [vmem:[%s1491_s3 + $0x18] sm:$0xff] }
 0x111   : > { %v590_v34 = vadd.f32 %v584_v44, %v2118_v43  ;;  %v550_v30 = vpop.permute.xlu1 %549  ;;  %v548_v10 = vpop.permute.xlu0 %547 }
 0x112   : > { %v553_v63 = vsub.f32 %v2130_v27, %v550_v30  ;;  %v554_v7 = vsub.f32 %v548_v10, %v2178_v52 }
 0x113   : > { %949 = vrot.lane.b32.xlu2 %v2152_v60, %s1378_s21 }
 0x114   : > { %v575_v23 = vmul.f32 %v553_v63, %v553_v63  ;;  %v576_v33 = vmul.f32 %v554_v7, %v554_v7 }
 0x115   : > { %v649_v55 = vpop.permute.xlu2 %648 }
 0x116   : > { %v577_v1 = vsel %vm1503_vm5, %v575_v23, 0.0  ;;  %v578_v54 = vsel %vm1536_vm9, %v576_v33, 0.0 }
 0x117   : > { %v579_v16 = vadd.f32 %v578_v54, %v577_v1  ;;  %953 = vrot.lane.b32.xlu1 %v2152_v60, %s1377_s17  ;;  %951 = vrot.lane.b32.xlu0 %v2134_v5, %s1377_s17  ;;  %v725_v60 = vsub.f32 %v1923_v11, %v2260_v58 }
 0x119   : > { %v589_v43 = vadd.f32 %v579_v16, %v2156_v39  ;;  %v607_v27 = vpop.permute.xlu1 %606  ;;  %v605_v52 = vpop.permute.xlu0 %604  ;;  %v766_v29 = vmul.f32 %v725_v60, %v725_v60 }
 0x11a   : > { %v624_v0 = vadd.f32 %v609_v14, %v605_v52 }
 0x11b   : > { %957 = vrot.lane.b32.xlu2 %v923_v47, %s1378_s21  ;;  %v768_v12 = vsel %vm1503_vm5, %v766_v29, 0.0 }
 0x11c   : > { %v626_v5 = vsub.f32 %v624_v0, %v2166_v6  ;;  %v770_v44 = vadd.f32 %v769_v41, %v768_v12 }
 0x11d   : > { %v655_v3 = vpop.permute.xlu2 %654 }
 0x11e   : > { %v668_v14 = vmul.f32 %v626_v5, %v626_v5  ;;  %v2282_v23 = vadd.f32 %v770_v44, %v689_v36 }
 0x11f   : > { %961 = vrot.lane.b32.xlu1 %v923_v47, %s1377_s17  ;;  %959 = vrot.lane.b32.xlu0 %v924_v19, %s1378_s21 }
 0x120   : > { %v670_v37 = vsel %vm1503_vm5, %v668_v14, 0.0 }
 0x121   : > { %v639_v39 = vpop.permute.xlu1 %638  ;;  %v611_v62 = vpop.permute.xlu0 %610 }
 0x122   : > { %v625_v28 = vadd.f32 %v611_v62, %v607_v27 }
 0x123   : > { %963 = vrot.lane.b32.xlu2 %v924_v19, %s1377_s17  ;;  %s1295_s17 = scalar_lea.hbm %s2508_s1, 288 }
 0x124   : > { %v627_v11 = vsub.f32 %v625_v28, %v2207_v8  ;;  %p1297_p8 = scmp.lt.s32.totalorder %s1295_s17, %s1291_s29 }
 0x125   : > { %v712_v42 = vpop.permute.xlu2 %711 }
 0x126   : > { %v669_v40 = vmul.f32 %v627_v11, %v627_v11  ;;  %v1236_v11 = vld [vmem:[%s1491_s3 + $0x30] sm:$0xff]  ;;  %p1298_p10 = por %p1297_p8, %p1296_p7 }
 0x128   : > { %v671_v46 = vsel %vm1536_vm9, %v669_v40, 0.0  ;;  %v1238_v40 = vld [vmem:[%s1491_s3 + $0x38] sm:$0xff]  ;;  %p1299_p11 = pnand %p1298_p10, %p1294_p6 }
 0x129   : > { %v672_v21 = vadd.f32 %v671_v46, %v670_v37  ;;  %v645_v30 = vpop.permute.xlu1 %644  ;;  %v643_v10 = vpop.permute.xlu0 %642  ;;  %v308_v41 = vadd.f32 %v1238_v40, %v1237_v25  ;;  %v2307_v37 = vmul.f32 2.0, %v1949_v50 }
 0x12a   : > { %v647_v63 = vsub.f32 %v641_v51, %v645_v30  ;;  %v646_v7 = vsub.f32 %v639_v39, %v643_v10  ;;  %v1240_v30 = vld [vmem:[%s1491_s3 + $0x40] sm:$0xff] }
 0x12b   : > { %v2284_v33 = vadd.f32 %v672_v21, %v587_v53  ;;  %v828_v46 = vsub.f32 %v2031_v24, %v2307_v37  ;;  %v310_v21 = vsub.f32 %v308_v41, %v1850_v61  ;;  %v2321_v24 = vmul.f32 2.0, %v1973_v31 }
 0x12c   : > { %v684_v1 = vmul.f32 %v647_v63, %v647_v63  ;;  %v683_v54 = vmul.f32 %v646_v7, %v646_v7  ;;  %v1241_v63 = vld [vmem:[%s1491_s3 + $0x28] sm:$0xff] }
 0x12d   : > { %v2286_v16 = vpop.permute.xlu2 %743  ;;  %v1242_v7 = vld [vmem:[%s1491_s3 + $0x48] sm:$0xff] }
 0x12e   : > { %v686_v27 = vsel %vm1536_vm9, %v684_v1, 0.0  ;;  %v685_v52 = vsel %vm1503_vm5, %v683_v54, 0.0  ;;  %v411_v1 = vadd.f32 %v1242_v7, %v1241_v63 }
 0x12f   : > { %v687_v47 = vadd.f32 %v686_v27, %v685_v52 }
 0x131   : > { %v2292_v0 = vadd.f32 %v687_v47, %v590_v34  ;;  %v653_v51 = vpop.permute.xlu1 %652  ;;  %v651_v36 = vpop.permute.xlu0 %650  ;;  %v869_v47 = vmul.f32 %v828_v46, %v828_v46 }
 0x132   : > { %v656_v53 = vsub.f32 %v649_v55, %v653_v51  ;;  %v657_v19 = vsub.f32 %v651_v36, %v655_v3  ;;  %v1235_v3 = vld [vmem:[%s1491_s3 + $0x10] sm:$0xff]  ;;  %v350_v36 = vmul.f32 %v310_v21, %v310_v21 }
 0x133   : > { %v307_v12 = vadd.f32 %v1236_v11, %v1235_v3 }
 0x134   : > { %v678_v60 = vmul.f32 %v656_v53, %v656_v53  ;;  %v679_v5 = vmul.f32 %v657_v19, %v657_v19  ;;  %v829_v53 = vsub.f32 %v2053_v48, %v2321_v24  ;;  %v413_v19 = vsub.f32 %v411_v1, %v1932_v57 }
 0x135   : > { %v2294_v39 = vpop.permute.xlu2 %751  ;;  %v309_v44 = vsub.f32 %v307_v12, %v1821_v22  ;;  %v352_v48 = vsel %vm1536_vm9, %v350_v36, 0.0 }
 0x136   : > { %v680_v62 = vsel %vm1503_vm5, %v678_v60, 0.0  ;;  %v681_v29 = vsel %vm1536_vm9, %v679_v5, 0.0  ;;  %v453_v25 = vmul.f32 %v413_v19, %v413_v19 }
 0x137   : > { %v682_v28 = vadd.f32 %v681_v29, %v680_v62  ;;  %v349_v22 = vmul.f32 %v309_v44, %v309_v44  ;;  %v1243_v62 = vld [vmem:[%s1491_s3 + $0x50] sm:$0xff] }
 0x138   : > { %v513_v29 = vadd.f32 %v1243_v62, %v1236_v11 }
 0x139   : > { %v2300_v34 = vadd.f32 %v682_v28, %v589_v43  ;;  %v710_v20 = vpop.permute.xlu1 %709  ;;  %v708_v14 = vpop.permute.xlu0 %707  ;;  %v1244_v28 = vld [vmem:[%s1491_s3 + $0x58] sm:$0xff] }
 0x13a   : > { %v727_v55 = vadd.f32 %v712_v42, %v708_v14  ;;  %v1239_v42 = vld [vmem:[%s1491_s3 + $0x20] sm:$0xff]  ;;  %v514_v14 = vadd.f32 %v1244_v28, %v1238_v40  ;;  %v515_v44 = vsub.f32 %v513_v29, %v2000_v45 }
 0x13b   : > { %v410_v10 = vadd.f32 %v1240_v30, %v1239_v42  ;;  %v616_v42 = vadd.f32 %v1240_v30, %v1786_v56 }
 0x13c   : > { %v729_v54 = vsub.f32 %v727_v55, %v2260_v58  ;;  %v871_v55 = vsel %vm1503_vm5, %v869_v47, 0.0  ;;  %v516_v21 = vsub.f32 %v514_v14, %v2042_v35 }
 0x13d   : > { %v2311_v43 = vpop.permute.xlu2 %757  ;;  %v412_v61 = vsub.f32 %v410_v10, %v1908_v2  ;;  %v351_v2 = vsel %vm1503_vm5, %v349_v22, 0.0 }
 0x13e   : > { %v771_v60 = vmul.f32 %v729_v54, %v729_v54  ;;  %v617_v54 = vadd.f32 %v1242_v7, %v1795_v59  ;;  %v353_v36 = vadd.f32 %v352_v48, %v351_v2  ;;  %v556_v7 = vmul.f32 %v516_v21, %v516_v21 }
 0x13f   : > { %v452_v12 = vmul.f32 %v412_v61, %v412_v61  ;;  %v455_v61 = vsel %vm1536_vm9, %v453_v25, 0.0  ;;  %v822_v25 = vadd.f32 %v2015_v9, %v1786_v56 }
 0x140   : > { %v773_v11 = vsel %vm1503_vm5, %v771_v60, 0.0  ;;  %v720_v60 = vadd.f32 %v1244_v28, %v1973_v31  ;;  %v379_v29 = vadd.f32 %v353_v36, %v1773_v49 }
 0x141   : > { %v742_v27 = vpop.permute.xlu1 %741  ;;  %v714_v52 = vpop.permute.xlu0 %713  ;;  %v454_v45 = vsel %vm1503_vm5, %v452_v12, 0.0 }
 0x142   : > { %v728_v51 = vadd.f32 %v714_v52, %v710_v20  ;;  %v870_v20 = vmul.f32 %v829_v53, %v829_v53  ;;  %v555_v53 = vmul.f32 %v515_v44, %v515_v44  ;;  %v456_v14 = vadd.f32 %v455_v61, %v454_v45 }
 0x144   : > { %v730_v5 = vsub.f32 %v728_v51, %v2268_v26  ;;  %v872_v57 = vsel %vm1536_vm9, %v870_v20, 0.0 }
 0x145   : > { %v2342_v41 = vpop.permute.xlu2 %814  ;;  %v873_v46 = vadd.f32 %v872_v57, %v871_v55  ;;  %v557_v55 = vsel %vm1503_vm5, %v555_v53, 0.0  ;;  %v722_v57 = vsub.f32 %v720_v60, %v2268_v26  ;;  %v903_v53 = vmul.f32 2.0, %v2015_v9 }
 0x146   : > { %v772_v3 = vmul.f32 %v730_v5, %v730_v5 }
 0x147   : > { %v2350_v51 = vadd.f32 %v873_v46, %v2282_v23  ;;  %v719_v23 = vadd.f32 %v1243_v62, %v1949_v50  ;;  %v482_v46 = vadd.f32 %v456_v14, %v379_v29  ;;  %v762_v21 = vmul.f32 %v722_v57, %v722_v57 }
 0x148   : > { %v774_v40 = vsel %vm1536_vm9, %v772_v3, 0.0  ;;  %v904_v29 = vmul.f32 2.0, %v2027_v17 }
 0x149   : > { %v775_v10 = vadd.f32 %v774_v40, %v773_v11  ;;  %v748_v63 = vpop.permute.xlu1 %747  ;;  %v746_v1 = vpop.permute.xlu0 %745  ;;  %v721_v48 = vsub.f32 %v719_v23, %v2260_v58 }
 0x14a   : > { %v750_v52 = vsub.f32 %v2286_v16, %v748_v63  ;;  %v749_v47 = vsub.f32 %v742_v27, %v746_v1  ;;  %v618_v16 = vsub.f32 %v616_v42, %v2166_v6  ;;  %v619_v27 = vsub.f32 %v617_v54, %v2207_v8 }
 0x14b   : > { %v2353_v22 = vadd.f32 %v775_v10, %v2284_v33  ;;  %v558_v6 = vsel %vm1536_vm9, %v556_v7, 0.0  ;;  %v925_v63 = vadd.f32 %v2123_v32, %v1949_v50  ;;  %v931_v32 = vsub.f32 %v2199_v18, %v903_v53 }
 0x14c   : > { %v787_v35 = vmul.f32 %v750_v52, %v750_v52  ;;  %v786_v30 = vmul.f32 %v749_v47, %v749_v47  ;;  %v658_v8 = vmul.f32 %v618_v16, %v618_v16  ;;  %v659_v2 = vmul.f32 %v619_v27, %v619_v27 }
 0x14d   : > { %v2378_v12 = vpop.permute.xlu2 %846  ;;  %v559_v44 = vadd.f32 %v558_v6, %v557_v55  ;;  %v927_v50 = vsub.f32 %v925_v63, %v903_v53  ;;  %v926_v27 = vadd.f32 %v2128_v13, %v1973_v31  ;;  %v972_v9 = vmul.f32 %v931_v32, %v931_v32 }
 0x14e   : > { %v789_v33 = vsel %vm1536_vm9, %v787_v35, 0.0  ;;  %v788_v19 = vsel %vm1503_vm5, %v786_v30, 0.0  ;;  %v660_v58 = vsel %vm1503_vm5, %v658_v8, 0.0  ;;  %v764_v35 = vsel %vm1536_vm9, %v762_v21, 0.0 }
 0x14f   : > { %v790_v5 = vadd.f32 %v789_v33, %v788_v19  ;;  %v585_v47 = vadd.f32 %v559_v44, %v482_v46  ;;  %v928_v18 = vsub.f32 %v926_v27, %v904_v29  ;;  %v932_v6 = vsub.f32 %v2210_v38, %v904_v29 }
 0x150   : > { %v974_v13 = vsel %vm1503_vm5, %v972_v9, 0.0 }
 0x151   : > { %v2373_v62 = vadd.f32 %v790_v5, %v2292_v0  ;;  %v756_v20 = vpop.permute.xlu1 %755  ;;  %v754_v3 = vpop.permute.xlu0 %753  ;;  %v823_v0 = vadd.f32 %v2027_v17, %v1795_v59  ;;  %v824_v59 = vsub.f32 %v822_v25, %v2307_v37  ;;  %v967_v5 = vmul.f32 %v927_v50, %v927_v50 }
 0x152   : > { %v759_v28 = vsub.f32 %v2294_v39, %v756_v20  ;;  %v760_v49 = vsub.f32 %v754_v3, %v2311_v43  ;;  %v661_v39 = vsel %vm1536_vm9, %v659_v2, 0.0  ;;  %v761_v43 = vmul.f32 %v721_v48, %v721_v48 }
 0x153   : > { %v825_v10 = vsub.f32 %v823_v0, %v2321_v24  ;;  %v662_v36 = vadd.f32 %v661_v39, %v660_v58  ;;  %v864_v30 = vmul.f32 %v824_v59, %v824_v59  ;;  %v969_v31 = vsel %vm1503_vm5, %v967_v5, 0.0 }
 0x154   : > { %v781_v11 = vmul.f32 %v759_v28, %v759_v28  ;;  %v782_v40 = vmul.f32 %v760_v49, %v760_v49  ;;  %v763_v45 = vsel %vm1503_vm5, %v761_v43, 0.0  ;;  %v968_v8 = vmul.f32 %v928_v18, %v928_v18 }
 0x155   : > { %v865_v61 = vmul.f32 %v825_v10, %v825_v10  ;;  %v2405_v7 = vpop.permute.xlu2 %854  ;;  %v765_v16 = vadd.f32 %v764_v35, %v763_v45  ;;  %v866_v23 = vsel %vm1503_vm5, %v864_v30, 0.0  ;;  %v973_v20 = vmul.f32 %v932_v6, %v932_v6 }
 0x156   : > { %v783_v26 = vsel %vm1503_vm5, %v781_v11, 0.0  ;;  %v784_v56 = vsel %vm1536_vm9, %v782_v40, 0.0  ;;  %v970_v17 = vsel %vm1536_vm9, %v968_v8, 0.0 }
 0x157   : > { %v785_v42 = vadd.f32 %v784_v56, %v783_v26  ;;  %v867_v33 = vsel %vm1536_vm9, %v865_v61, 0.0  ;;  %v975_v48 = vsel %vm1536_vm9, %v973_v20, 0.0  ;;  %v971_v28 = vadd.f32 %v970_v17, %v969_v31 }
 0x158   : > { %v868_v55 = vadd.f32 %v867_v33, %v866_v23  ;;  %v976_v49 = vadd.f32 %v975_v48, %v974_v13 }
 0x159   : > { %v2398_v1 = vadd.f32 %v785_v42, %v2300_v34  ;;  %v813_v54 = vpop.permute.xlu1 %812  ;;  %v811_v52 = vpop.permute.xlu0 %810  ;;  %v688_v34 = vadd.f32 %v662_v36, %v585_v47 }
 0x15a   : > { %v998_v0 = vadd.f32 %v976_v49, %v2350_v51  ;;  %v830_v58 = vadd.f32 %v2342_v41, %v811_v52 }
 0x15b   : > { %v791_v14 = vadd.f32 %v765_v16, %v688_v34 }
 0x15c   : > { %1004 = vst [vmem:[%s2215_s30 + $0x8] sm:$0xff] %v998_v0  ;;  %v832_v21 = vsub.f32 %v830_v58, %v2307_v37 }
 0x15d   : > { %v894_v3 = vadd.f32 %v868_v55, %v791_v14  ;;  %v861_v2 = vpop.permute.xlu2 %860 }
 0x15e   : > { %v874_v63 = vmul.f32 %v832_v21, %v832_v21 }
 0x15f   : > { %v997_v25 = vadd.f32 %v971_v28, %v894_v3 }
 0x161   : > { %v845_v19 = vpop.permute.xlu1 %844  ;;  %v817_v60 = vpop.permute.xlu0 %816  ;;  %1003 = vst [vmem:[%s2215_s30] sm:$0xff] %v997_v25 }
 0x162   : > { %v831_v44 = vadd.f32 %v817_v60, %v813_v54 }
 0x164   : > { %v833_v26 = vsub.f32 %v831_v44, %v2321_v24  ;;  %v876_v24 = vsel %vm1503_vm5, %v874_v63, 0.0 }
 0x165   : > { %v918_v11 = vpop.permute.xlu2 %917 }
 0x166   : > { %v875_v59 = vmul.f32 %v833_v26, %v833_v26 }
 0x168   : > { %v877_v54 = vsel %vm1536_vm9, %v875_v59, 0.0 }
 0x169   : > { %v851_v38 = vpop.permute.xlu1 %850  ;;  %v849_v57 = vpop.permute.xlu0 %848  ;;  %v878_v61 = vadd.f32 %v877_v54, %v876_v24 }
 0x16a   : > { %v853_v10 = vsub.f32 %v2378_v12, %v851_v38  ;;  %v852_v51 = vsub.f32 %v845_v19, %v849_v57 }
 0x16b   : > { %v896_v33 = vadd.f32 %v878_v61, %v2353_v22 }
 0x16c   : > { %v890_v52 = vmul.f32 %v853_v10, %v853_v10  ;;  %v889_v35 = vmul.f32 %v852_v51, %v852_v51 }
 0x16d   : > { %v950_v56 = vpop.permute.xlu2 %949 }
 0x16e   : > { %v891_v32 = vsel %vm1503_vm5, %v889_v35, 0.0 }
 0x171   : > { %v859_v40 = vpop.permute.xlu1 %858  ;;  %v857_v46 = vpop.permute.xlu0 %856 }
 0x172   : > { %v862_v34 = vsub.f32 %v2405_v7, %v859_v40  ;;  %v863_v16 = vsub.f32 %v857_v46, %v861_v2 }
 0x174   : > { %v884_v7 = vmul.f32 %v862_v34, %v862_v34  ;;  %v885_v18 = vmul.f32 %v863_v16, %v863_v16 }
 0x175   : > { %v958_v12 = vpop.permute.xlu2 %957 }
 0x176   : > { %v886_v2 = vsel %vm1503_vm5, %v884_v7, 0.0  ;;  %v887_v17 = vsel %vm1536_vm9, %v885_v18, 0.0 }
 0x177   : > { %v888_v25 = vadd.f32 %v887_v17, %v886_v2 }
 0x179   : > { %v916_v39 = vpop.permute.xlu1 %915  ;;  %v914_v43 = vpop.permute.xlu0 %913  ;;  %v898_v46 = vadd.f32 %v888_v25, %v2398_v1 }
 0x17a   : > { %v933_v42 = vadd.f32 %v918_v11, %v914_v43 }
 0x17c   : > { %v935_v47 = vsub.f32 %v933_v42, %v903_v53  ;;  %v892_v53 = vsel %vm1536_vm9, %v890_v52, 0.0 }
 0x17d   : > { %v893_v14 = vadd.f32 %v892_v53, %v891_v32  ;;  %v964_v3 = vpop.permute.xlu2 %963 }
 0x17e   : > { %v977_v37 = vmul.f32 %v935_v47, %v935_v47 }
 0x17f   : > { %v899_v8 = vadd.f32 %v893_v14, %v2373_v62 }
 0x180   : > { %v979_v27 = vsel %vm1503_vm5, %v977_v37, 0.0 }
 0x181   : > { %v948_v36 = vpop.permute.xlu1 %947  ;;  %v920_v45 = vpop.permute.xlu0 %919 }
 0x182   : > { %v934_v41 = vadd.f32 %v920_v45, %v916_v39 }
 0x184   : > { %v936_v30 = vsub.f32 %v934_v41, %v904_v29 }
 0x186   : > { %v978_v50 = vmul.f32 %v936_v30, %v936_v30 }
 0x188   : > { %v980_v23 = vsel %vm1536_vm9, %v978_v50, 0.0 }
 0x189   : > { %v981_v19 = vadd.f32 %v980_v23, %v979_v27  ;;  %v954_v60 = vpop.permute.xlu1 %953  ;;  %v952_v5 = vpop.permute.xlu0 %951 }
 0x18a   : > { %v956_v9 = vsub.f32 %v950_v56, %v954_v60  ;;  %v955_v29 = vsub.f32 %v948_v36, %v952_v5 }
 0x18b   : > { %v999_v55 = vadd.f32 %v981_v19, %v896_v33 }
 0x18c   : > { %v993_v6 = vmul.f32 %v956_v9, %v956_v9  ;;  %v992_v31 = vmul.f32 %v955_v29, %v955_v29 }
 0x18d   : > { %1005 = vst [vmem:[%s2215_s30 + $0x10] sm:$0xff] %v999_v55 }
 0x18e   : > { %v995_v13 = vsel %vm1536_vm9, %v993_v6, 0.0  ;;  %v994_v22 = vsel %vm1503_vm5, %v992_v31, 0.0 }
 0x18f   : > { %v996_v20 = vadd.f32 %v995_v13, %v994_v22 }
 0x191   : > { %v1002_v48 = vadd.f32 %v996_v20, %v899_v8  ;;  %v962_v28 = vpop.permute.xlu1 %961  ;;  %v960_v49 = vpop.permute.xlu0 %959 }
 0x192   : > { %v965_v38 = vsub.f32 %v958_v12, %v962_v28  ;;  %v966_v57 = vsub.f32 %v960_v49, %v964_v3 }
 0x193   : > { %1008 = vst [vmem:[%s2215_s30 + $0x28] sm:$0xff] %v1002_v48 }
 0x194   : > { %v987_v62 = vmul.f32 %v965_v38, %v965_v38  ;;  %v988_v0 = vmul.f32 %v966_v57, %v966_v57 }
 0x196   : > { %v989_v11 = vsel %vm1503_vm5, %v987_v62, 0.0  ;;  %v990_v40 = vsel %vm1536_vm9, %v988_v0, 0.0 }
 0x197   : > { %v991_v44 = vadd.f32 %v990_v40, %v989_v11 }
 0x199   : > { %v1001_v58 = vadd.f32 %v991_v44, %v898_v46 }
 0x19b   : > { %1007 = vst [vmem:[%s2215_s30 + $0x20] sm:$0xff] %v1001_v58 }
 0x19c   : > { %1302 = shalt.err (!%p1299_p11)
}
 0x19d   : > { %s1379_s28 = smov 128   ;;  %s1380_s30 = smov 8  }
 0x19e   : > { %1153 = dma.vmem_to_hbm [thread:$0]  (%p1456_p9), %s1025_s23, 768, %s1027_s18, %s1010_s20, %s1379_s28, %s1379_s28, %s1380_s30  }
 0x19f PF: > { %p1164_p13 = scmp.ge.s32.totalorder %s1373_s13, 2  ;;  %s1041_s4 = sand.u32 1, %s1345_s6  }
 0x1a0   : > { %s1042_s5 = scalar_lea.sflag [#allocation4], %s1041_s4 }
 0x1a1   : > { %p1160_p0 = pnand %p1164_p13, %p1462_p12 }
 0x1a3   : > { %p1161_p1 = pneg %p1160_p0 }
 0x1a5   : > { %1340 = dma.done.wait (%p1161_p1), %s1042_s5, 768  }
 0x1a6   : > { %1342 = vsyncadd (%p1161_p1), %s1042_s5, 4294966528  ;;  %s17_s13 = sadd.s32 1, %s1373_s13   ;;  %s2520_s22 = sld [smem:[#allocation8_spill]] }
 0x1a7   : > { %p14_p2 = scmp.ge.s32.totalorder %s17_s13, 8   ;;  %s2521_s6 = smov %s1349_s7 }
 0x1a8   : > { %s2522_s7 = smov %s1353_s8  ;;  %s2523_s8 = smov %s1469_s27 }
 0x1a9   : > { %s2524_s9 = smov %s1365_s11  ;;  %s2525_s10 = smov %s1369_s12 }
 0x1aa   : > { %s2526_s11 = smov %s2529_s16  ;;  %16 = sbr.rel (!%p14_p2) target bundleno = 7 (0x7), region = 78 }
 0x1ac   : > { %s2527_s12 = smov %s2520_s22 }
 0x1af   :  { %1048 = vsyncpa [#allocation3], 1 }
 0x1b0   :  { %1050 = vsyncpa [#allocation3 + $0x1], 1 }
 0x1b1   :  { %1051 = vsyncpa [#allocation4], 1 }
 0x1b2   :  { %1053 = vsyncpa [#allocation4 + $0x1], 1 }

</bundles_post_ra>
